<compile_context>
chip_gen: v5e
topology: v5e:2x2
jax: 0.10.0
libtpu: 0.0.40
codegen_flags: <defaults>
</compile_context>

<pallas_src>
import functools

import jax
import jax.numpy as jnp
from jax.experimental import pallas as pl
from jax.experimental.pallas import tpu as pltpu


def _round_up(x, m):
    return (x + m - 1) // m * m


def make_textcnn_kernel(kernel_wins, dim_channel, num_class, seq_len):
    """Fused conv -> bias -> ReLU -> max-pool -> FC kernel body.

    Per grid step: sees a (TB, L_pad, E) embedding tile, writes a
    (TB, num_class) logits tile.
    """
    n_k = len(kernel_wins)

    def kernel(emb_ref, *refs):
        conv_w_refs = refs[0:n_k]            # each (w*E, C)   pre-packed on host
        conv_b_refs = refs[n_k:2 * n_k]      # each (1, C)
        fc_w_ref = refs[2 * n_k]             # (n_k*C, num_class)  pre-transposed
        fc_b_ref = refs[2 * n_k + 1]         # (1, num_class)
        out_ref = refs[2 * n_k + 2]          # (TB, num_class)

        e = emb_ref[...]                     # (TB, L_pad, E)
        TB, L_pad, E = e.shape
        N = TB * L_pad
        e2d = e.reshape(N, E)                # sublane-aligned merge (L_pad % 8 == 0)

        # Time index of every row; hoisted once per grid step (no re-broadcast
        # per window / per tap).
        t_idx = jax.lax.broadcasted_iota(jnp.int32, (TB, L_pad, dim_channel), 1)

        pooled = []
        for j, w in enumerate(kernel_wins):
            L_out = seq_len - w + 1          # static valid conv length
            # im2col patch: lane-block i holds rows shifted by i time steps.
            # Full-length rolls (instead of misaligned slices); wrapped rows
            # land only in t >= L_out which is masked below.
            taps = [e2d if i == 0 else jnp.roll(e2d, -i, axis=0) for i in range(w)]
            patch = jnp.concatenate(taps, axis=-1)                  # (N, w*E)
            # One MXU push per window: M = TB*L_pad, K = w*E, N = C.
            conv = jnp.dot(patch, conv_w_refs[j][...],
                           preferred_element_type=jnp.float32)      # (N, C) f32
            conv = jnp.maximum(conv + conv_b_refs[j][...], 0.0)     # bias + ReLU (f32 VPU)
            conv3 = conv.reshape(TB, L_pad, dim_channel)
            # Zero out rows past the valid conv length (covers time padding,
            # roll wrap-around). Safe after ReLU since valid values are >= 0.
            conv3 = jnp.where(t_idx < L_out, conv3, 0.0)
            pooled.append(jnp.max(conv3, axis=1))                   # (TB, C)

        feat = jnp.concatenate(pooled, axis=-1)                     # (TB, n_k*C)
        # TODO(synk): dropout(p=0.4) is identity here (eval-mode forward).
        logits = jnp.dot(feat, fc_w_ref[...],
                         preferred_element_type=jnp.float32) + fc_b_ref[...]
        out_ref[...] = logits.astype(out_ref.dtype)

    return kernel


@functools.partial(
    jax.jit,
    static_argnames=("kernel_wins", "dim_channel", "num_class", "batch_tile"))
def textcnn_forward(tokens, emb_table, conv_ws, conv_bs, fc_w, fc_b,
                    *, kernel_wins, dim_channel, num_class, batch_tile=None):
    # Embedding lookup (gather) is glue, done in plain JAX.
    # TODO(synk): at production sizes, fuse the gather via scalar-prefetched
    # token ids to avoid the HBM round trip of the (B, L, E) activation.
    emb = emb_table[tokens].astype(jnp.float32)          # (B, L, E)
    B, L, E = emb.shape

    TB = batch_tile if batch_tile is not None else min(128, _round_up(B, 8))
    B_pad = _round_up(B, TB)
    L_pad = _round_up(L, 8)
    if (B_pad, L_pad) != (B, L):
        emb = jnp.pad(emb, ((0, B_pad - B), (0, L_pad - L), (0, 0)))

    # Host-side (free) weight re-layout so the kernel never transposes.
    #   Conv2d weight (C, w, E) -> fused im2col weight (w*E, C)
    #   Linear weight (num_class, n_k*C) -> (n_k*C, num_class)
    # NOTE: on v6e/v7x the matmul operands could be cast to bf16 here (the
    # kernel already accumulates in f32); kept f32 for exact parity with the
    # f32 reference. On v5e the elementwise path must stay f32 anyway.
    conv_w_packed = [
        jnp.transpose(W.astype(jnp.float32), (1, 2, 0)).reshape(w * E, dim_channel)
        for w, W in zip(kernel_wins, conv_ws)
    ]
    conv_b_f = [b.astype(jnp.float32) for b in conv_bs]
    fc_w_t = jnp.transpose(fc_w.astype(jnp.float32))     # (n_k*C, num_class)
    fc_b_f = fc_b.astype(jnp.float32)                    # (1, num_class)

    inputs = [emb]
    in_specs = [pl.BlockSpec((TB, L_pad, E), lambda b: (b, 0, 0))]
    for Wp in conv_w_packed:                              # full-array blocks
        in_specs.append(pl.BlockSpec(Wp.shape, lambda b: (0, 0)))
        inputs.append(Wp)
    for bv in conv_b_f:
        in_specs.append(pl.BlockSpec(bv.shape, lambda b: (0, 0)))
        inputs.append(bv)
    in_specs.append(pl.BlockSpec(fc_w_t.shape, lambda b: (0, 0)))
    inputs.append(fc_w_t)
    in_specs.append(pl.BlockSpec(fc_b_f.shape, lambda b: (0, 0)))
    inputs.append(fc_b_f)

    kernel = make_textcnn_kernel(kernel_wins, dim_channel, num_class, L)

    out = pl.pallas_call(
        kernel,
        out_shape=jax.ShapeDtypeStruct((B_pad, num_class), jnp.float32),
        grid_spec=pltpu.PrefetchScalarGridSpec(
            num_scalar_prefetch=0,
            grid=(B_pad // TB,),
            in_specs=in_specs,
            out_specs=pl.BlockSpec((TB, num_class), lambda b: (b, 0)),
        ),
        compiler_params=pltpu.CompilerParams(
            dimension_semantics=("parallel",),   # batch axis shards across TCs (v7x)
        ),
    )(*inputs)
    return out[:B]


def textcnn_reference(tokens, emb_table, conv_ws, conv_bs, fc_w, fc_b, kernel_wins):
    """Pure-JAX reference mirroring the PyTorch forward (eval mode)."""
    emb = emb_table[tokens]                              # (B, L, E)
    B, L, E = emb.shape
    pooled = []
    for j, w in enumerate(kernel_wins):
        W = conv_ws[j]                                   # (C, w, E)
        L_out = L - w + 1
        acc = jnp.zeros((B, L_out, W.shape[0]), jnp.float32)
        for i in range(w):
            acc = acc + jnp.einsum("ble,ce->blc", emb[:, i:i + L_out, :], W[:, i, :])
        acc = acc + conv_bs[j][None, :, :]               # (B, L_out, C)
        acc = jnp.maximum(acc, 0.0)
        pooled.append(jnp.max(acc, axis=1))              # (B, C)
    feat = jnp.concatenate(pooled, axis=-1)              # (B, n_k*C)
    return feat @ fc_w.T + fc_b                          # (B, num_class)


if __name__ == "__main__":
    # Small, module-consistent shapes.
    vocab_size = 50
    emb_dim = 32
    seq_len = 16
    dim_channel = 8
    kernel_wins = (3, 4, 5)
    num_class = 4
    batch = 2

    key = jax.random.PRNGKey(0)
    k_emb, k_tok, k_fcw, k_fcb, *k_convs = jax.random.split(key, 5 + 2 * len(kernel_wins))

    emb_table = jax.random.normal(k_emb, (vocab_size, emb_dim), jnp.float32) * 0.1
    tokens = jax.random.randint(k_tok, (batch, seq_len), 0, vocab_size, jnp.int32)

    conv_ws = []
    conv_bs = []
    for idx, w in enumerate(kernel_wins):
        kw = k_convs[2 * idx]
        kb = k_convs[2 * idx + 1]
        conv_ws.append(jax.random.normal(kw, (dim_channel, w, emb_dim), jnp.float32) * 0.05)
        conv_bs.append(jax.random.normal(kb, (1, dim_channel), jnp.float32) * 0.05)

    fc_in = len(kernel_wins) * dim_channel
    fc_w = jax.random.normal(k_fcw, (num_class, fc_in), jnp.float32) * 0.1
    fc_b = jax.random.normal(k_fcb, (1, num_class), jnp.float32) * 0.1

    logits = textcnn_forward(
        tokens, emb_table, tuple(conv_ws), tuple(conv_bs), fc_w, fc_b,
        kernel_wins=kernel_wins, dim_channel=dim_channel, num_class=num_class,
    )
    logits = jax.block_until_ready(logits)

    ref = textcnn_reference(tokens, emb_table, conv_ws, conv_bs, fc_w, fc_b, kernel_wins)
    assert logits.shape == (batch, num_class)
    assert jnp.allclose(logits, ref, atol=1e-4, rtol=1e-4), (logits, ref)

    print("KERNEL_OK")
</pallas_src>

<mosaic_0001>
module attributes {stable_mosaic.version = 11 : i64} {
  func.func @kernel(%arg0: i32, %arg1: memref<8x16x32xf32, #tpu.memory_space<vmem>>, %arg2: memref<96x8xf32, #tpu.memory_space<vmem>>, %arg3: memref<128x8xf32, #tpu.memory_space<vmem>>, %arg4: memref<160x8xf32, #tpu.memory_space<vmem>>, %arg5: memref<1x8xf32, #tpu.memory_space<vmem>>, %arg6: memref<1x8xf32, #tpu.memory_space<vmem>>, %arg7: memref<1x8xf32, #tpu.memory_space<vmem>>, %arg8: memref<24x4xf32, #tpu.memory_space<vmem>>, %arg9: memref<1x4xf32, #tpu.memory_space<vmem>>, %arg10: memref<8x4xf32, #tpu.memory_space<vmem>>) attributes {dimension_semantics = [#tpu.dimension_semantics<parallel>], iteration_bounds = array<i64: 1>, scalar_prefetch = 0 : i64, scratch_operands = 0 : i64, tpu.core_type = #tpu.core_type<tc>, window_params = [{transform_indices = @transform_0, window_bounds = array<i64: 8, 16, 32>}, {pipeline_mode = #tpu.pipeline_mode<synchronous>, transform_indices = @transform_1, window_bounds = array<i64: 96, 8>}, {pipeline_mode = #tpu.pipeline_mode<synchronous>, transform_indices = @transform_2, window_bounds = array<i64: 128, 8>}, {pipeline_mode = #tpu.pipeline_mode<synchronous>, transform_indices = @transform_3, window_bounds = array<i64: 160, 8>}, {pipeline_mode = #tpu.pipeline_mode<synchronous>, transform_indices = @transform_4, window_bounds = array<i64: 1, 8>}, {pipeline_mode = #tpu.pipeline_mode<synchronous>, transform_indices = @transform_5, window_bounds = array<i64: 1, 8>}, {pipeline_mode = #tpu.pipeline_mode<synchronous>, transform_indices = @transform_6, window_bounds = array<i64: 1, 8>}, {pipeline_mode = #tpu.pipeline_mode<synchronous>, transform_indices = @transform_7, window_bounds = array<i64: 24, 4>}, {pipeline_mode = #tpu.pipeline_mode<synchronous>, transform_indices = @transform_8, window_bounds = array<i64: 1, 4>}, {transform_indices = @transform_9, window_bounds = array<i64: 8, 4>}]} {
    %c0 = arith.constant 0 : index
    %c0_0 = arith.constant 0 : index
    %c0_1 = arith.constant 0 : index
    %0 = vector.load %arg1[%c0, %c0_0, %c0_1] : memref<8x16x32xf32, #tpu.memory_space<vmem>>, vector<8x16x32xf32>
    %1 = vector.shape_cast %0 : vector<8x16x32xf32> to vector<128x32xf32>
    %2 = tpu.iota {dimensions = array<i32: 1>} : vector<8x16x8xi32>
    %3 = vector.extract_strided_slice %1 {offsets = [1, 0], sizes = [127, 32], strides = [1, 1]} : vector<128x32xf32> to vector<127x32xf32>
    %4 = vector.extract_strided_slice %1 {offsets = [0, 0], sizes = [1, 32], strides = [1, 1]} : vector<128x32xf32> to vector<1x32xf32>
    %5 = tpu.concatenate %3, %4 in 0 : vector<127x32xf32>, vector<1x32xf32> -> vector<128x32xf32>
    %6 = vector.extract_strided_slice %1 {offsets = [2, 0], sizes = [126, 32], strides = [1, 1]} : vector<128x32xf32> to vector<126x32xf32>
    %7 = vector.extract_strided_slice %1 {offsets = [0, 0], sizes = [2, 32], strides = [1, 1]} : vector<128x32xf32> to vector<2x32xf32>
    %8 = tpu.concatenate %6, %7 in 0 : vector<126x32xf32>, vector<2x32xf32> -> vector<128x32xf32>
    %9 = tpu.concatenate %1, %5, %8 in 1 : vector<128x32xf32>, vector<128x32xf32>, vector<128x32xf32> -> vector<128x96xf32>
    %c0_2 = arith.constant 0 : index
    %c0_3 = arith.constant 0 : index
    %10 = vector.load %arg2[%c0_2, %c0_3] : memref<96x8xf32, #tpu.memory_space<vmem>>, vector<96x8xf32>
    %cst = arith.constant dense<0.000000e+00> : vector<128x8xf32>
    %11 = tpu.matmul %9, %10, %cst {dimension_numbers = #tpu.dot_dimension_numbers<[1], [0], [0], [1], [0, 0, 1, 1], [], []>} : vector<128x96xf32>, vector<96x8xf32>, vector<128x8xf32> -> vector<128x8xf32>
    %c0_4 = arith.constant 0 : index
    %c0_5 = arith.constant 0 : index
    %12 = vector.load %arg5[%c0_4, %c0_5] : memref<1x8xf32, #tpu.memory_space<vmem>>, vector<1x8xf32>
    %13 = vector.broadcast %12 : vector<1x8xf32> to vector<128x8xf32>
    %14 = arith.addf %11, %13 : vector<128x8xf32>
    %cst_6 = arith.constant 0.000000e+00 : f32
    %15 = vector.broadcast %cst_6 : f32 to vector<128x8xf32>
    %16 = arith.maximumf %14, %15 : vector<128x8xf32>
    %17 = vector.shape_cast %16 : vector<128x8xf32> to vector<8x16x8xf32>
    %c14_i32 = arith.constant 14 : i32
    %18 = vector.broadcast %c14_i32 : i32 to vector<8x16x8xi32>
    %19 = arith.cmpi slt, %2, %18 : vector<8x16x8xi32>
    %cst_7 = arith.constant 0.000000e+00 : f32
    %20 = vector.broadcast %cst_7 : f32 to vector<8x16x8xf32>
    %21 = arith.select %19, %17, %20 : vector<8x16x8xi1>, vector<8x16x8xf32>
    %cst_8 = arith.constant dense<0xFF800000> : vector<8x8xf32>
    %22 = vector.multi_reduction <maximumf>, %21, %cst_8 [1] : vector<8x16x8xf32> to vector<8x8xf32>
    %23 = vector.extract_strided_slice %1 {offsets = [1, 0], sizes = [127, 32], strides = [1, 1]} : vector<128x32xf32> to vector<127x32xf32>
    %24 = vector.extract_strided_slice %1 {offsets = [0, 0], sizes = [1, 32], strides = [1, 1]} : vector<128x32xf32> to vector<1x32xf32>
    %25 = tpu.concatenate %23, %24 in 0 : vector<127x32xf32>, vector<1x32xf32> -> vector<128x32xf32>
    %26 = vector.extract_strided_slice %1 {offsets = [2, 0], sizes = [126, 32], strides = [1, 1]} : vector<128x32xf32> to vector<126x32xf32>
    %27 = vector.extract_strided_slice %1 {offsets = [0, 0], sizes = [2, 32], strides = [1, 1]} : vector<128x32xf32> to vector<2x32xf32>
    %28 = tpu.concatenate %26, %27 in 0 : vector<126x32xf32>, vector<2x32xf32> -> vector<128x32xf32>
    %29 = vector.extract_strided_slice %1 {offsets = [3, 0], sizes = [125, 32], strides = [1, 1]} : vector<128x32xf32> to vector<125x32xf32>
    %30 = vector.extract_strided_slice %1 {offsets = [0, 0], sizes = [3, 32], strides = [1, 1]} : vector<128x32xf32> to vector<3x32xf32>
    %31 = tpu.concatenate %29, %30 in 0 : vector<125x32xf32>, vector<3x32xf32> -> vector<128x32xf32>
    %32 = tpu.concatenate %1, %25, %28, %31 in 1 : vector<128x32xf32>, vector<128x32xf32>, vector<128x32xf32>, vector<128x32xf32> -> vector<128x128xf32>
    %c0_9 = arith.constant 0 : index
    %c0_10 = arith.constant 0 : index
    %33 = vector.load %arg3[%c0_9, %c0_10] : memref<128x8xf32, #tpu.memory_space<vmem>>, vector<128x8xf32>
    %cst_11 = arith.constant dense<0.000000e+00> : vector<128x8xf32>
    %34 = tpu.matmul %32, %33, %cst_11 {dimension_numbers = #tpu.dot_dimension_numbers<[1], [0], [0], [1], [0, 0, 1, 1], [], []>} : vector<128x128xf32>, vector<128x8xf32>, vector<128x8xf32> -> vector<128x8xf32>
    %c0_12 = arith.constant 0 : index
    %c0_13 = arith.constant 0 : index
    %35 = vector.load %arg6[%c0_12, %c0_13] : memref<1x8xf32, #tpu.memory_space<vmem>>, vector<1x8xf32>
    %36 = vector.broadcast %35 : vector<1x8xf32> to vector<128x8xf32>
    %37 = arith.addf %34, %36 : vector<128x8xf32>
    %cst_14 = arith.constant 0.000000e+00 : f32
    %38 = vector.broadcast %cst_14 : f32 to vector<128x8xf32>
    %39 = arith.maximumf %37, %38 : vector<128x8xf32>
    %40 = vector.shape_cast %39 : vector<128x8xf32> to vector<8x16x8xf32>
    %c13_i32 = arith.constant 13 : i32
    %41 = vector.broadcast %c13_i32 : i32 to vector<8x16x8xi32>
    %42 = arith.cmpi slt, %2, %41 : vector<8x16x8xi32>
    %cst_15 = arith.constant 0.000000e+00 : f32
    %43 = vector.broadcast %cst_15 : f32 to vector<8x16x8xf32>
    %44 = arith.select %42, %40, %43 : vector<8x16x8xi1>, vector<8x16x8xf32>
    %cst_16 = arith.constant dense<0xFF800000> : vector<8x8xf32>
    %45 = vector.multi_reduction <maximumf>, %44, %cst_16 [1] : vector<8x16x8xf32> to vector<8x8xf32>
    %46 = vector.extract_strided_slice %1 {offsets = [1, 0], sizes = [127, 32], strides = [1, 1]} : vector<128x32xf32> to vector<127x32xf32>
    %47 = vector.extract_strided_slice %1 {offsets = [0, 0], sizes = [1, 32], strides = [1, 1]} : vector<128x32xf32> to vector<1x32xf32>
    %48 = tpu.concatenate %46, %47 in 0 : vector<127x32xf32>, vector<1x32xf32> -> vector<128x32xf32>
    %49 = vector.extract_strided_slice %1 {offsets = [2, 0], sizes = [126, 32], strides = [1, 1]} : vector<128x32xf32> to vector<126x32xf32>
    %50 = vector.extract_strided_slice %1 {offsets = [0, 0], sizes = [2, 32], strides = [1, 1]} : vector<128x32xf32> to vector<2x32xf32>
    %51 = tpu.concatenate %49, %50 in 0 : vector<126x32xf32>, vector<2x32xf32> -> vector<128x32xf32>
    %52 = vector.extract_strided_slice %1 {offsets = [3, 0], sizes = [125, 32], strides = [1, 1]} : vector<128x32xf32> to vector<125x32xf32>
    %53 = vector.extract_strided_slice %1 {offsets = [0, 0], sizes = [3, 32], strides = [1, 1]} : vector<128x32xf32> to vector<3x32xf32>
    %54 = tpu.concatenate %52, %53 in 0 : vector<125x32xf32>, vector<3x32xf32> -> vector<128x32xf32>
    %55 = vector.extract_strided_slice %1 {offsets = [4, 0], sizes = [124, 32], strides = [1, 1]} : vector<128x32xf32> to vector<124x32xf32>
    %56 = vector.extract_strided_slice %1 {offsets = [0, 0], sizes = [4, 32], strides = [1, 1]} : vector<128x32xf32> to vector<4x32xf32>
    %57 = tpu.concatenate %55, %56 in 0 : vector<124x32xf32>, vector<4x32xf32> -> vector<128x32xf32>
    %58 = tpu.concatenate %1, %48, %51, %54, %57 in 1 : vector<128x32xf32>, vector<128x32xf32>, vector<128x32xf32>, vector<128x32xf32>, vector<128x32xf32> -> vector<128x160xf32>
    %c0_17 = arith.constant 0 : index
    %c0_18 = arith.constant 0 : index
    %59 = vector.load %arg4[%c0_17, %c0_18] : memref<160x8xf32, #tpu.memory_space<vmem>>, vector<160x8xf32>
    %cst_19 = arith.constant dense<0.000000e+00> : vector<128x8xf32>
    %60 = tpu.matmul %58, %59, %cst_19 {dimension_numbers = #tpu.dot_dimension_numbers<[1], [0], [0], [1], [0, 0, 1, 1], [], []>} : vector<128x160xf32>, vector<160x8xf32>, vector<128x8xf32> -> vector<128x8xf32>
    %c0_20 = arith.constant 0 : index
    %c0_21 = arith.constant 0 : index
    %61 = vector.load %arg7[%c0_20, %c0_21] : memref<1x8xf32, #tpu.memory_space<vmem>>, vector<1x8xf32>
    %62 = vector.broadcast %61 : vector<1x8xf32> to vector<128x8xf32>
    %63 = arith.addf %60, %62 : vector<128x8xf32>
    %cst_22 = arith.constant 0.000000e+00 : f32
    %64 = vector.broadcast %cst_22 : f32 to vector<128x8xf32>
    %65 = arith.maximumf %63, %64 : vector<128x8xf32>
    %66 = vector.shape_cast %65 : vector<128x8xf32> to vector<8x16x8xf32>
    %c12_i32 = arith.constant 12 : i32
    %67 = vector.broadcast %c12_i32 : i32 to vector<8x16x8xi32>
    %68 = arith.cmpi slt, %2, %67 : vector<8x16x8xi32>
    %cst_23 = arith.constant 0.000000e+00 : f32
    %69 = vector.broadcast %cst_23 : f32 to vector<8x16x8xf32>
    %70 = arith.select %68, %66, %69 : vector<8x16x8xi1>, vector<8x16x8xf32>
    %cst_24 = arith.constant dense<0xFF800000> : vector<8x8xf32>
    %71 = vector.multi_reduction <maximumf>, %70, %cst_24 [1] : vector<8x16x8xf32> to vector<8x8xf32>
    %72 = tpu.concatenate %22, %45, %71 in 1 : vector<8x8xf32>, vector<8x8xf32>, vector<8x8xf32> -> vector<8x24xf32>
    %c0_25 = arith.constant 0 : index
    %c0_26 = arith.constant 0 : index
    %73 = vector.load %arg8[%c0_25, %c0_26] : memref<24x4xf32, #tpu.memory_space<vmem>>, vector<24x4xf32>
    %cst_27 = arith.constant dense<0.000000e+00> : vector<8x4xf32>
    %74 = tpu.matmul %72, %73, %cst_27 {dimension_numbers = #tpu.dot_dimension_numbers<[1], [0], [0], [1], [0, 0, 1, 1], [], []>} : vector<8x24xf32>, vector<24x4xf32>, vector<8x4xf32> -> vector<8x4xf32>
    %c0_28 = arith.constant 0 : index
    %c0_29 = arith.constant 0 : index
    %75 = vector.load %arg9[%c0_28, %c0_29] : memref<1x4xf32, #tpu.memory_space<vmem>>, vector<1x4xf32>
    %76 = vector.broadcast %75 : vector<1x4xf32> to vector<8x4xf32>
    %77 = arith.addf %74, %76 : vector<8x4xf32>
    %c0_30 = arith.constant 0 : index
    %c0_31 = arith.constant 0 : index
    %78 = vector.load %arg10[%c0_30, %c0_31] : memref<8x4xf32, #tpu.memory_space<vmem>>, vector<8x4xf32>
    tpu.vector_store %arg10[%c0_30, %c0_31], %77 {strides = array<i32>} : memref<8x4xf32, #tpu.memory_space<vmem>>, vector<8x4xf32>,
    return
  }
  func.func @transform_0(%arg0: i32) -> (i32, i32, i32) {
    %c0_i32 = arith.constant 0 : i32
    %c0_i32_0 = arith.constant 0 : i32
    %c0_i32_1 = arith.constant 0 : i32
    return %arg0, %c0_i32, %c0_i32_0 : i32, i32, i32
  }
  func.func @transform_1(%arg0: i32) -> (i32, i32) {
    %c0_i32 = arith.constant 0 : i32
    %c0_i32_0 = arith.constant 0 : i32
    %c0_i32_1 = arith.constant 0 : i32
    return %c0_i32, %c0_i32_0 : i32, i32
  }
  func.func @transform_2(%arg0: i32) -> (i32, i32) {
    %c0_i32 = arith.constant 0 : i32
    %c0_i32_0 = arith.constant 0 : i32
    %c0_i32_1 = arith.constant 0 : i32
    return %c0_i32, %c0_i32_0 : i32, i32
  }
  func.func @transform_3(%arg0: i32) -> (i32, i32) {
    %c0_i32 = arith.constant 0 : i32
    %c0_i32_0 = arith.constant 0 : i32
    %c0_i32_1 = arith.constant 0 : i32
    return %c0_i32, %c0_i32_0 : i32, i32
  }
  func.func @transform_4(%arg0: i32) -> (i32, i32) {
    %c0_i32 = arith.constant 0 : i32
    %c0_i32_0 = arith.constant 0 : i32
    %c0_i32_1 = arith.constant 0 : i32
    return %c0_i32, %c0_i32_0 : i32, i32
  }
  func.func @transform_5(%arg0: i32) -> (i32, i32) {
    %c0_i32 = arith.constant 0 : i32
    %c0_i32_0 = arith.constant 0 : i32
    %c0_i32_1 = arith.constant 0 : i32
    return %c0_i32, %c0_i32_0 : i32, i32
  }
  func.func @transform_6(%arg0: i32) -> (i32, i32) {
    %c0_i32 = arith.constant 0 : i32
    %c0_i32_0 = arith.constant 0 : i32
    %c0_i32_1 = arith.constant 0 : i32
    return %c0_i32, %c0_i32_0 : i32, i32
  }
  func.func @transform_7(%arg0: i32) -> (i32, i32) {
    %c0_i32 = arith.constant 0 : i32
    %c0_i32_0 = arith.constant 0 : i32
    %c0_i32_1 = arith.constant 0 : i32
    return %c0_i32, %c0_i32_0 : i32, i32
  }
  func.func @transform_8(%arg0: i32) -> (i32, i32) {
    %c0_i32 = arith.constant 0 : i32
    %c0_i32_0 = arith.constant 0 : i32
    %c0_i32_1 = arith.constant 0 : i32
    return %c0_i32, %c0_i32_0 : i32, i32
  }
  func.func @transform_9(%arg0: i32) -> (i32, i32) {
    %c0_i32 = arith.constant 0 : i32
    %c0_i32_0 = arith.constant 0 : i32
    return %arg0, %c0_i32 : i32, i32
  }
}

</mosaic_0001>

<bundles_post_ra>
// kernel: textcnn_forward.1
= control target key start
LH: loop header
LB: loop body
LE: loop exit
PB: predicated region body
PF: predicated region fallthrough
CT: control target
= control target key end

     0   :  { %vm67_vm0 = vcmask 1046528   ;;  %vm506_vm1 = vcmask 1044480   ;;  %s1291_s15 = smov 32   ;;  %vm102_vm2 = vcmask 1045504   ;;  %s1292_s16 = smov 96   ;;  %vm797_vm3 = vcmask 1043456   ;;  %s2097_s0 = inlined_call_operand.vmem [shape: f32[8,16,32], index: 0, kind: input, shape index: {}]   ;;  %s2098_s2 = inlined_call_operand.vmem [shape: f32[128,8], index: 2, kind: input, shape index: {}]   ;;  %s2099_s3 = inlined_call_operand.vmem [shape: f32[160,8], index: 3, kind: input, shape index: {}]   ;;  %s2100_s1 = inlined_call_operand.vmem [shape: f32[96,8], index: 1, kind: input, shape index: {}]   ;;  %s2101_s4 = inlined_call_operand.vmem [shape: f32[1,8], index: 4, kind: input, shape index: {}]   ;;  %s2102_s5 = inlined_call_operand.vmem [shape: f32[1,8], index: 5, kind: input, shape index: {}]   ;;  %s2103_s6 = inlined_call_operand.vmem [shape: f32[1,8], index: 6, kind: input, shape index: {}]   ;;  %s2104_s7 = inlined_call_operand.vmem [shape: f32[24,4], index: 7, kind: input, shape index: {}]   ;;  %s2105_s8 = inlined_call_operand.vmem [shape: f32[1,4], index: 8, kind: input, shape index: {}]   ;;  %s2106_s9 = inlined_call_operand.vmem [shape: f32[8,4], index: 9, kind: output, shape index: {}]  }
   0x1   :  { %v1349_v0 = vld [vmem:[%s2097_s0] sm:$0xff]  ;;  %v1354_v1 = vld [vmem:[%s2097_s0 + $0x8] sm:$0xff]  ;;  %v1359_v2 = vld [vmem:[%s2097_s0 + $0x10] sm:$0xff]  ;;  %s1293_s19 = smov 64   ;;  %vm235_vm4 = vcmask 261120   ;;  %vm252_vm5 = vcmask 523264  }
   0x2   :  { %v68_v3 = vrot.slane %v1349_v0, 1  ;;  %v69_v4 = vrot.slane %v1354_v1, 1  ;;  %v507_v5 = vrot.slane %v1349_v0, 3  ;;  %v508_v6 = vrot.slane %v1354_v1, 3  ;;  %v1382_v16 = vld [vmem:[%s2097_s0 + $0x18] sm:$0xff]  ;;  %v1393_v20 = vld [vmem:[%s2097_s0 + $0x20] sm:$0xff] }
   0x3   :  { %v510_v7 = vrot.slane %v1359_v2, 3  ;;  %v104_v11 = vrot.slane %v1354_v1, 2  ;;  %v106_v12 = vrot.slane %v1359_v2, 2  ;;  %v103_v14 = vrot.slane %v1349_v0, 2  ;;  %v1413_v33 = vld [vmem:[%s2097_s0 + $0x28] sm:$0xff]  ;;  %v1418_v34 = vld [vmem:[%s2097_s0 + $0x30] sm:$0xff] }
   0x4   :  { %v70_v8 = vsel %vm67_vm0, %v68_v3, %v69_v4  ;;  %v509_v9 = vsel %vm506_vm1, %v507_v5, %v508_v6  ;;  %v71_v17 = vrot.slane %v1359_v2, 1  ;;  %v73_v18 = vrot.slane %v1382_v16, 1  ;;  %v1438_v46 = vld [vmem:[%s2097_s0 + $0x38] sm:$0xff]  ;;  %v1449_v52 = vld [vmem:[%s2097_s0 + $0x40] sm:$0xff]  ;;  %v1470_v63 = vld [vmem:[%s2097_s0 + $0x48] sm:$0xff]  ;;  %s1295_s13 = smov 16  }
   0x5   :  { %138 = vrot.lane.b32.xlu0 %v70_v8, %s1291_s15  ;;  %v511_v10 = vsel %vm506_vm1, %v508_v6, %v510_v7  ;;  %v107_v15 = vsel %vm102_vm2, %v104_v11, %v106_v12  ;;  %v105_v19 = vsel %vm102_vm2, %v103_v14, %v104_v11  ;;  %v512_v22 = vrot.slane %v1382_v16, 3  ;;  %v621_v60 = vld [vmem:[%s2098_s2 + $0x78] sm:$0xff]  ;;  %v846_v6 = vld [vmem:[%s2099_s3 + $0x70] sm:$0xff] }
   0x6   :  { %v1262_v13 = vpack.i.bf16 %v511_v10, %v509_v9  ;;  %189 = vrot.lane.b32.xlu2 %v107_v15, %s1293_s19  ;;  %v72_v21 = vsel %vm67_vm0, %v69_v4, %v71_v17  ;;  %v514_v23 = vrot.slane %v1393_v20, 3  ;;  %v74_v24 = vsel %vm67_vm0, %v71_v17, %v73_v18  ;;  %v847_v61 = vld [vmem:[%s2099_s3 + $0x78] sm:$0xff]  ;;  %626 = vmatpush.msra.mxu1 %v621_v60  ;;  %v620_v4 = vld [vmem:[%s2098_s2 + $0x70] sm:$0xff]  ;;  %v619_v17 = vld [vmem:[%s2098_s2 + $0x68] sm:$0xff] }
   0x7   :  { %v108_v25 = vrot.slane %v1382_v16, 2  ;;  %v513_v26 = vsel %vm506_vm1, %v510_v7, %v512_v22  ;;  %v75_v29 = vrot.slane %v1393_v20, 1  ;;  %v110_v32 = vrot.slane %v1393_v20, 2  ;;  %889 = vmatpush.msra.mxu2 %v847_v61  ;;  %v1486_v10 = vld [vmem:[%s2097_s0 + $0x50] sm:$0xff]  ;;  %v1591_v60 = vld [vmem:[%s2097_s0 + $0x60] sm:$0xff]  ;;  %v611_v61 = vld [vmem:[%s2098_s2 + $0x28] sm:$0xff] }
   0x8   :  { %1263 = vrot.lane.b32.xlu1 %v1262_v13, %s1292_s16  ;;  %v515_v27 = vsel %vm506_vm1, %v512_v22, %v514_v23  ;;  %v77_v35 = vrot.slane %v1413_v33, 1  ;;  %v112_v36 = vrot.slane %v1413_v33, 2  ;;  %v516_v38 = vrot.slane %v1413_v33, 3  ;;  %627 = vmatpush.msra.mxu1 %v620_v4  ;;  %v844_v22 = vld [vmem:[%s2099_s3 + $0x60] sm:$0xff] }
   0x9   :  { %v109_v28 = vsel %vm102_vm2, %v106_v12, %v108_v25  ;;  %v1267_v30 = vpack.i.bf16 %v515_v27, %v513_v26  ;;  %v76_v31 = vsel %vm67_vm0, %v73_v18, %v75_v29  ;;  %v111_v37 = vsel %vm102_vm2, %v108_v25, %v110_v32  ;;  %890 = vmatpush.msra.mxu2 %v846_v6  ;;  %v845_v18 = vld [vmem:[%s2099_s3 + $0x68] sm:$0xff]  ;;  %v617_v25 = vld [vmem:[%s2098_s2 + $0x58] sm:$0xff] }
   0xa   :  { %v518_v39 = vrot.slane %v1418_v34, 3  ;;  %v78_v40 = vsel %vm67_vm0, %v75_v29, %v77_v35  ;;  %v113_v41 = vsel %vm102_vm2, %v110_v32, %v112_v36  ;;  %v517_v42 = vsel %vm506_vm1, %v514_v23, %v516_v38  ;;  %628 = vmatpush.msra.mxu1 %v619_v17  ;;  %v280_v23 = vld [vmem:[%s2100_s1 + $0x58] sm:$0xff]  ;;  %v278_v29 = vld [vmem:[%s2100_s1 + $0x48] sm:$0xff]  ;;  %v1622_v17 = vld [vmem:[%s2097_s0 + $0x70] sm:$0xff] }
   0xb   :  { %v79_v45 = vrot.slane %v1418_v34, 1  ;;  %v114_v47 = vrot.slane %v1418_v34, 2  ;;  %v520_v50 = vrot.slane %v1438_v46, 3  ;;  %v81_v51 = vrot.slane %v1438_v46, 1  ;;  %891 = vmatpush.msra.mxu2 %v845_v18  ;;  %338 = vmatpush.msra.mxu0 %v280_v23  ;;  %v843_v26 = vld [vmem:[%s2099_s3 + $0x58] sm:$0xff]  ;;  %v273_v18 = vld [vmem:[%s2100_s1 + $0x20] sm:$0xff] }
   0xc   :  { %v519_v43 = vsel %vm506_vm1, %v516_v38, %v518_v39  ;;  %v522_v53 = vrot.slane %v1449_v52, 3  ;;  %v116_v54 = vrot.slane %v1438_v46, 2  ;;  %v83_v62 = vrot.slane %v1449_v52, 1  ;;  %v615_v38 = vld [vmem:[%s2098_s2 + $0x48] sm:$0xff] }
   0xd   :  { %187 = vrot.lane.b32.xlu0 %v105_v19, %s1293_s19  ;;  %v1272_v44 = vpack.i.bf16 %v519_v43, %v517_v42  ;;  %v80_v48 = vsel %vm67_vm0, %v77_v35, %v79_v45  ;;  %v115_v49 = vsel %vm102_vm2, %v112_v36, %v114_v47  ;;  %v521_v55 = vsel %vm506_vm1, %v518_v39, %v520_v50  ;;  %v842_v35 = vld [vmem:[%s2099_s3 + $0x50] sm:$0xff]  ;;  %v277_v39 = vld [vmem:[%s2100_s1 + $0x40] sm:$0xff]  ;;  %v841_v42 = vld [vmem:[%s2099_s3 + $0x48] sm:$0xff] }
   0xe   :  { %142 = vrot.lane.b32.xlu2 %v74_v24, %s1291_s15  ;;  %v523_v56 = vsel %vm506_vm1, %v520_v50, %v522_v53  ;;  %v82_v57 = vsel %vm67_vm0, %v79_v45, %v81_v51  ;;  %v117_v59 = vsel %vm102_vm2, %v114_v47, %v116_v54  ;;  %v118_v7 = vrot.slane %v1449_v52, 2  ;;  %v279_v24 = vld [vmem:[%s2100_s1 + $0x50] sm:$0xff]  ;;  %892 = vmatpush.msra.mxu2 %v844_v22  ;;  %v614_v43 = vld [vmem:[%s2098_s2 + $0x40] sm:$0xff]  ;;  %v613_v47 = vld [vmem:[%s2098_s2 + $0x38] sm:$0xff] }
   0xf   :  { %v1277_v58 = vpack.i.bf16 %v523_v56, %v521_v55  ;;  %v85_v8 = vrot.slane %v1470_v63, 1  ;;  %v84_v9 = vsel %vm67_vm0, %v81_v51, %v83_v62  ;;  %v524_v12 = vrot.slane %v1470_v63, 3  ;;  %339 = vmatpush.msra.mxu0 %v279_v24  ;;  %v840_v45 = vld [vmem:[%s2099_s3 + $0x40] sm:$0xff]  ;;  %v274_v55 = vld [vmem:[%s2100_s1 + $0x28] sm:$0xff]  ;;  %v838_v56 = vld [vmem:[%s2099_s3 + $0x30] sm:$0xff] }
  0x10   :  { %140 = vrot.lane.b32.xlu1 %v72_v21, %s1291_s15  ;;  %v119_v11 = vsel %vm102_vm2, %v116_v54, %v118_v7  ;;  %v526_v13 = vrot.slane %v1486_v10, 3  ;;  %v120_v19 = vrot.slane %v1470_v63, 2  ;;  %v618_v21 = vld [vmem:[%s2098_s2 + $0x60] sm:$0xff]  ;;  %v87_v32 = vrot.slane %v1486_v10, 1  ;;  %893 = vmatpush.msra.mxu2 %v843_v26  ;;  %v612_v54 = vld [vmem:[%s2098_s2 + $0x30] sm:$0xff]  ;;  %v272_v24 = vld [vmem:[%s2100_s1 + $0x18] sm:$0xff] }
  0x11   :  { %v86_v15 = vsel %vm67_vm0, %v83_v62, %v85_v8  ;;  %v525_v27 = vsel %vm506_vm1, %v522_v53, %v524_v12  ;;  %629 = vmatpush.msra.mxu1 %v618_v21  ;;  %340 = vmatpush.msra.mxu0 %v278_v29  ;;  %v839_v53 = vld [vmem:[%s2099_s3 + $0x38] sm:$0xff]  ;;  %v837_v62 = vld [vmem:[%s2099_s3 + $0x28] sm:$0xff]  ;;  %v91_v4 = vrot.slane %v1591_v60, 1  ;;  %v836_v21 = vld [vmem:[%s2099_s3 + $0x20] sm:$0xff]  ;;  %v95_v22 = vrot.slane %v1622_v17, 1 }
  0x12   :  { %894 = vmatpush.msra.mxu2 %v842_v35  ;;  %v835_v26 = vld [vmem:[%s2099_s3 + $0x18] sm:$0xff]  ;;  %v608_v29 = vld [vmem:[%s2098_s2 + $0x10] sm:$0xff]  ;;  %vm285_vm6 = vcmask 785408   ;;  %vm433_vm8 = vcmask 64512   ;;  %vm1133_vm11 = vcmask 1041409   ;;  %vm1135_vm12 = vcmask 1042434  }
  0x13   :  { %630 = vmatpush.msra.mxu1 %v617_v25  ;;  %341 = vmatpush.msra.mxu0 %v277_v39  ;;  %v609_v25 = vld [vmem:[%s2098_s2 + $0x18] sm:$0xff]  ;;  %v607_v39 = vld [vmem:[%s2098_s2 + $0x8] sm:$0xff]  ;;  %vm1137_vm13 = vcmask 1043459   ;;  %vm1139_vm14 = vcmask 1044484   ;;  %vm1141_vm15 = vcmask 1045509  }
  0x14   :  { %895 = vmatpush.msra.mxu2 %v841_v42  ;;  %v850_v42 = vld [vmem:[%s2099_s3 + $0x90] sm:$0xff] }
  0x15   :  { %191 = vrot.lane.b32.xlu0 %v109_v28, %s1293_s19  ;;  %v527_v28 = vsel %vm506_vm1, %v524_v12, %v526_v13 }
  0x16   :  { %144 = vrot.lane.b32.xlu2 %v76_v31, %s1291_s15  ;;  %v616_v31 = vld [vmem:[%s2098_s2 + $0x50] sm:$0xff]  ;;  %v1282_v36 = vpack.i.bf16 %v527_v28, %v525_v27  ;;  %896 = vmatpush.msra.mxu2 %v840_v45  ;;  %v126_v28 = vrot.slane %v1591_v60, 2  ;;  %v832_v45 = vld [vmem:[%s2099_s3] sm:$0xff] }
  0x17   :  { %631 = vmatpush.msra.mxu1 %v616_v31  ;;  %v271_v27 = vld [vmem:[%s2100_s1 + $0x10] sm:$0xff]  ;;  %v851_v31 = vld [vmem:[%s2099_s3 + $0x98] sm:$0xff] }
  0x18   :  { %1268 = vrot.lane.b32.xlu1 %v1267_v30, %s1292_s16  ;;  %v121_v30 = vsel %vm102_vm2, %v118_v7, %v120_v19  ;;  %897 = vmatpush.msra.mxu2 %v839_v53  ;;  %v848_v53 = vld [vmem:[%s2099_s3 + $0x80] sm:$0xff] }
  0x19   :  { %632 = vmatpush.msra.mxu1 %v615_v38  ;;  %v1668_v38 = vld [vmem:[%s2097_s0 + $0x78] sm:$0xff]  ;;  %966 = vmatpush.msra.mxu3 %v851_v31 }
  0x1a   :  { %898 = vmatpush.msra.mxu2 %v838_v56 }
  0x1b   :  { %633 = vmatpush.msra.mxu1 %v614_v43  ;;  %v269_v43 = vld [vmem:[%s2100_s1] sm:$0xff]  ;;  %967 = vmatpush.msra.mxu3 %v850_v42 }
  0x1c   :  { %899 = vmatpush.msra.mxu2 %v837_v62  ;;  %v130_v62 = vrot.slane %v1622_v17, 2 }
  0x1d   :  { %193 = vrot.lane.b32.xlu0 %v111_v37, %s1293_s19  ;;  %v88_v37 = vsel %vm67_vm0, %v85_v8, %v87_v32  ;;  %634 = vmatpush.msra.mxu1 %v613_v47  ;;  %v530_v8 = vrot.slane %v1591_v60, 3  ;;  %v97_v47 = vrot.slane %v1668_v38, 1 }
  0x1e   :  { %195 = vrot.lane.b32.xlu2 %v113_v41, %s1293_s19  ;;  %v1547_v41 = vld [vmem:[%s2097_s0 + $0x58] sm:$0xff]  ;;  %900 = vmatpush.msra.mxu2 %v836_v21  ;;  %v805_v21 = vrot.slane %v1393_v20, 4 }
  0x1f   :  { %v124_v50 = vrot.slane %v1547_v41, 2  ;;  %635 = vmatpush.msra.mxu1 %v612_v54  ;;  %v98_v56 = vsel %vm67_vm0, %v95_v22, %v97_v47 }
  0x20   :  { %146 = vrot.lane.b32.xlu1 %v78_v40, %s1291_s15  ;;  %v122_v40 = vrot.slane %v1486_v10, 2  ;;  %901 = vmatpush.msra.mxu2 %v835_v26 }
  0x21   :  { %636 = vmatpush.msra.mxu1 %v611_v61  ;;  %v127_v35 = vsel %vm102_vm2, %v124_v50, %v126_v28  ;;  %v801_v61 = vrot.slane %v1359_v2, 4 }
  0x22   :  { %v123_v51 = vsel %vm102_vm2, %v120_v19, %v122_v40  ;;  %v610_v19 = vld [vmem:[%s2098_s2 + $0x20] sm:$0xff] }
  0x23   :  { %637 = vmatpush.msra.mxu1 %v610_v19 }
  0x25   :  { %1273 = vrot.lane.b32.xlu0 %v1272_v44, %s1292_s16  ;;  %v276_v44 = vld [vmem:[%s2100_s1 + $0x38] sm:$0xff]  ;;  %638 = vmatpush.msra.mxu1 %v609_v25 }
  0x26   :  { %197 = vrot.lane.b32.xlu2 %v115_v49, %s1293_s19  ;;  %v275_v49 = vld [vmem:[%s2100_s1 + $0x30] sm:$0xff]  ;;  %342 = vmatpush.msra.mxu0 %v276_v44  ;;  %v606_v44 = vld [vmem:[%s2098_s2] sm:$0xff] }
  0x27   :  { %639 = vmatpush.msra.mxu1 %v608_v29 }
  0x28   :  { %148 = vrot.lane.b32.xlu1 %v80_v48, %s1291_s15  ;;  %v89_v48 = vrot.slane %v1547_v41, 1  ;;  %343 = vmatpush.msra.mxu0 %v275_v49 }
  0x29   :  { %640 = vmatpush.msra.mxu1 %v607_v39 }
  0x2a   :  { %344 = vmatpush.msra.mxu0 %v274_v55  ;;  %v92_v7 = vsel %vm67_vm0, %v89_v48, %v91_v4 }
  0x2b   :  { %641 = vmatpush.msra.mxu1 %v606_v44 }
  0x2c   :  { %345 = vmatpush.msra.mxu0 %v273_v18 }
  0x2d   :  { %150 = vrot.lane.b32.xlu0 %v82_v57, %s1291_s15  ;;  %v90_v57 = vsel %vm67_vm0, %v87_v32, %v89_v48  ;;  %v849_v48 = vld [vmem:[%s2099_s3 + $0x88] sm:$0xff] }
  0x2e   :  { %1278 = vrot.lane.b32.xlu2 %v1277_v58, %s1292_s16  ;;  %v125_v58 = vsel %vm102_vm2, %v122_v40, %v124_v50  ;;  %346 = vmatpush.msra.mxu0 %v272_v24  ;;  %v833_v40 = vld [vmem:[%s2099_s3 + $0x8] sm:$0xff]  ;;  %v798_v50 = vrot.slane %v1349_v0, 4 }
  0x2f   :  { %968 = vmatpush.msra.mxu3 %v849_v48 }
  0x30   :  { %199 = vrot.lane.b32.xlu1 %v117_v59, %s1293_s19  ;;  %v528_v59 = vrot.slane %v1547_v41, 3  ;;  %347 = vmatpush.msra.mxu0 %v271_v27 }
  0x31   :  { %969 = vmatpush.msra.mxu3 %v848_v53 }
  0x32   :  { %v529_v6 = vsel %vm506_vm1, %v526_v13, %v528_v59  ;;  %v531_v12 = vsel %vm506_vm1, %v528_v59, %v530_v8 }
  0x35   :  { %152 = vrot.lane.b32.xlu0 %v84_v9, %s1291_s15  ;;  %v1611_v9 = vld [vmem:[%s2097_s0 + $0x68] sm:$0xff] }
  0x36   :  { %154 = vrot.lane.b32.xlu2 %v86_v15, %s1291_s15  ;;  %v532_v15 = vrot.slane %v1611_v9, 3  ;;  %v128_v54 = vrot.slane %v1611_v9, 2 }
  0x38   :  { %201 = vrot.lane.b32.xlu1 %v119_v11, %s1293_s19  ;;  %v93_v11 = vrot.slane %v1611_v9, 1  ;;  %v533_v23 = vsel %vm506_vm1, %v530_v8, %v532_v15 }
  0x3a   :  { %v94_v13 = vsel %vm67_vm0, %v91_v4, %v93_v11  ;;  %v96_v32 = vsel %vm67_vm0, %v93_v11, %v95_v22  ;;  %v803_v11 = vrot.slane %v1382_v16, 4 }
  0x3d   :  { %203 = vrot.lane.b32.xlu0 %v121_v30, %s1293_s19  ;;  %v834_v30 = vld [vmem:[%s2099_s3 + $0x10] sm:$0xff] }
  0x3e   :  { %156 = vrot.lane.b32.xlu2 %v88_v37, %s1291_s15  ;;  %v534_v37 = vrot.slane %v1622_v17, 3  ;;  %902 = vmatpush.msra.mxu2 %v834_v30 }
  0x40   :  { %1283 = vrot.lane.b32.xlu1 %v1282_v36, %s1292_s16  ;;  %v270_v36 = vld [vmem:[%s2100_s1 + $0x8] sm:$0xff]  ;;  %903 = vmatpush.msra.mxu2 %v833_v40  ;;  %v535_v49 = vsel %vm506_vm1, %v532_v15, %v534_v37  ;;  %v804_v15 = vsel %vm797_vm3, %v801_v61, %v803_v11 }
  0x41   :  { %348 = vmatpush.msra.mxu0 %v270_v36 }
  0x42   :  { %904 = vmatpush.msra.mxu2 %v832_v45 }
  0x43   :  { %349 = vmatpush.msra.mxu0 %v269_v43 }
  0x45   :  { %205 = vrot.lane.b32.xlu0 %v123_v51, %s1293_s19  ;;  %v799_v51 = vrot.slane %v1354_v1, 4 }
  0x46   :  { %207 = vrot.lane.b32.xlu2 %v125_v58, %s1293_s19  ;;  %v536_v58 = vrot.slane %v1668_v38, 3 }
  0x47   :  { %v800_v55 = vsel %vm797_vm3, %v798_v50, %v799_v51  ;;  %v802_v4 = vsel %vm797_vm3, %v799_v51, %v801_v61  ;;  %v811_v51 = vrot.slane %v1438_v46, 4 }
  0x48   :  { %158 = vrot.lane.b32.xlu1 %v90_v57, %s1291_s15  ;;  %v129_v57 = vsel %vm102_vm2, %v126_v28, %v128_v54  ;;  %1240 = vmatmul.msk.f32.vlgmr.msra.gmra.mxu3 %vm235_vm4, %v800_v55  ;;  %v537_v59 = vsel %vm506_vm1, %v534_v37, %v536_v58  ;;  %v540_v8 = vsel %vm506_vm1, %v536_v58, %v507_v5  ;;  %vm1145_vm1 = vcmask 1047559  }
  0x49   :  { %v806_v5 = vsel %vm797_vm3, %v803_v11, %v805_v21 }
  0x4d   :  { %562 = vrot.lane.b32.xlu0 %v529_v6, %s1292_s16  ;;  %v131_v6 = vsel %vm102_vm2, %v128_v54, %v130_v62 }
  0x4e   :  { %209 = vrot.lane.b32.xlu2 %v127_v35, %s1293_s19 }
  0x50   :  { %160 = vrot.lane.b32.xlu1 %v92_v7, %s1291_s15  ;;  %v101_v7 = vsel %vm67_vm0, %v97_v47, %v68_v3  ;;  %1241 = vmatmul.msk.f32.gmra.mxu3 %vm235_vm4, %v802_v4  ;;  %vm1143_vm0 = vcmask 1046534  }
  0x55   :  { %564 = vrot.lane.b32.xlu0 %v531_v12, %s1292_s16  ;;  %v132_v12 = vrot.slane %v1668_v38, 2 }
  0x56   :  { %211 = vrot.lane.b32.xlu2 %v129_v57, %s1293_s19 }
  0x57   :  { %v133_v18 = vsel %vm102_vm2, %v130_v62, %v132_v12  ;;  %v136_v22 = vsel %vm102_vm2, %v132_v12, %v103_v14  ;;  %v807_v14 = vrot.slane %v1413_v33, 4  ;;  %v815_v12 = vrot.slane %v1470_v63, 4 }
  0x58   :  { %162 = vrot.lane.b32.xlu1 %v94_v13, %s1291_s15  ;;  %1242 = vmatmul.msk.f32.gmra.mxu3 %vm235_vm4, %v804_v15  ;;  %vm1185_vm2 = vcmask 130048  }
  0x59   :  { %v808_v31 = vsel %vm797_vm3, %v805_v21, %v807_v14 }
  0x5d   :  { %566 = vrot.lane.b32.xlu0 %v533_v23, %s1292_s16 }
  0x5e   :  { %213 = vrot.lane.b32.xlu2 %v131_v6, %s1293_s19 }
  0x60   :  { %164 = vrot.lane.b32.xlu1 %v96_v32, %s1291_s15  ;;  %v190_v13 = vpop.permute.xlu2 %189  ;;  %1243 = vmatmul.msk.f32.gmra.mxu3 %vm235_vm4, %v806_v5 }
  0x65   :  { %568 = vrot.lane.b32.xlu0 %v535_v49, %s1292_s16 }
  0x66   :  { %215 = vrot.lane.b32.xlu2 %v133_v18, %s1293_s19 }
  0x68   :  { %166 = vrot.lane.b32.xlu1 %v98_v56, %s1291_s15  ;;  %v143_v24 = vpop.permute.xlu2 %142  ;;  %1244 = vmatmul.msk.f32.gmra.mxu3 %vm235_vm4, %v808_v31 }
  0x69   :  { %v238_v39 = vsel %vm235_vm4, %v1359_v2, %v143_v24 }
  0x6d   :  { %570 = vrot.lane.b32.xlu0 %v537_v59, %s1292_s16 }
  0x6e   :  { %217 = vrot.lane.b32.xlu2 %v136_v22, %s1293_s19 }
  0x70   :  { %168 = vrot.lane.b32.xlu1 %v101_v7, %s1291_s15  ;;  %v145_v37 = vpop.permute.xlu2 %144 }
  0x71   :  { %v239_v53 = vsel %vm235_vm4, %v1382_v16, %v145_v37  ;;  %v813_v16 = vrot.slane %v1449_v52, 4 }
  0x73   :  { %v814_v7 = vsel %vm797_vm3, %v811_v51, %v813_v16  ;;  %v816_v18 = vsel %vm797_vm3, %v813_v16, %v815_v12 }
  0x75   :  { %572 = vrot.lane.b32.xlu0 %v540_v8, %s1292_s16 }
  0x77   :  { %v139_v3 = vpop.permute.xlu0 %138 }
  0x78   :  { %v236_v25 = vsel %vm235_vm4, %v1349_v0, %v139_v3  ;;  %v196_v2 = vpop.permute.xlu2 %195 }
  0x7a   :  { %v1264_v19 = vpop.permute.xlu1 %1263 }
  0x7b   :  { %v1265_v23 = vunpack.i.l.bf16 %v1264_v19  ;;  %v1266_v35 = vunpack.i.h.bf16 %v1264_v19 }
  0x7f   :  { %v188_v26 = vpop.permute.xlu0 %187 }
  0x80   :  { %v253_v27 = vsel %vm252_vm5, %v236_v25, %v188_v26  ;;  %v198_v4 = vpop.permute.xlu2 %197 }
  0x81   :  { %1224 = vmatmul.msk.f32.vlgmr.msra.gmra.mxu0 %vm285_vm6, %v253_v27  ;;  %v590_v28 = vsel %vm285_vm6, %v253_v27, %v1265_v23 }
  0x82   :  { %v141_v29 = vpop.permute.xlu1 %140  ;;  %642 = vmatmul.f32.vlgmr.msra.gmra.mxu1 %v590_v28  ;;  %905 = vmatmul.f32.vlgmr.msra.gmra.mxu2 %v590_v28 }
  0x83   :  { %v237_v30 = vsel %vm235_vm4, %v1354_v1, %v141_v29  ;;  %v809_v1 = vrot.slane %v1418_v34, 4  ;;  %v819_v29 = vrot.slane %v1547_v41, 4 }
  0x84   :  { %v254_v32 = vsel %vm252_vm5, %v237_v30, %v190_v13 }
  0x85   :  { %v591_v40 = vsel %vm285_vm6, %v254_v32, %v1266_v35  ;;  %v810_v45 = vsel %vm797_vm3, %v807_v14, %v809_v1  ;;  %v812_v54 = vsel %vm797_vm3, %v809_v1, %v811_v51 }
  0x86   :  { %1245 = vmatmul.msk.f32.gmra.mxu3 %vm235_vm4, %v810_v45 }
  0x87   :  { %v192_v36 = vpop.permute.xlu0 %191 }
  0x88   :  { %v255_v44 = vsel %vm252_vm5, %v238_v39, %v192_v36  ;;  %v1279_v15 = vpop.permute.xlu2 %1278 }
  0x89   :  { %1225 = vmatmul.msk.f32.gmra.mxu0 %vm285_vm6, %v254_v32  ;;  %v1280_v23 = vunpack.i.l.bf16 %v1279_v15  ;;  %v1281_v32 = vunpack.i.h.bf16 %v1279_v15 }
  0x8a   :  { %645 = vmatmul.f32.gmra.mxu1 %v591_v40  ;;  %908 = vmatmul.f32.gmra.mxu2 %v591_v40  ;;  %v1269_v42 = vpop.permute.xlu1 %1268 }
  0x8b   :  { %v1270_v43 = vunpack.i.l.bf16 %v1269_v42  ;;  %v1271_v55 = vunpack.i.h.bf16 %v1269_v42 }
  0x8d   :  { %v592_v48 = vsel %vm285_vm6, %v255_v44, %v1270_v43 }
  0x8e   :  { %1246 = vmatmul.msk.f32.gmra.mxu3 %vm235_vm4, %v812_v54 }
  0x8f   :  { %v194_v47 = vpop.permute.xlu0 %193 }
  0x90   :  { %v256_v56 = vsel %vm252_vm5, %v239_v53, %v194_v47  ;;  %v155_v27 = vpop.permute.xlu2 %154 }
  0x91   :  { %1226 = vmatmul.msk.f32.gmra.mxu0 %vm285_vm6, %v255_v44  ;;  %v593_v59 = vsel %vm285_vm6, %v256_v56, %v1271_v55  ;;  %v244_v37 = vsel %vm235_vm4, %v1449_v52, %v155_v27 }
  0x92   :  { %648 = vmatmul.f32.gmra.mxu1 %v592_v48  ;;  %911 = vmatmul.f32.gmra.mxu2 %v592_v48  ;;  %v147_v49 = vpop.permute.xlu1 %146  ;;  %v823_v48 = vrot.slane %v1611_v9, 4 }
  0x93   :  { %v240_v58 = vsel %vm235_vm4, %v1393_v20, %v147_v49 }
  0x94   :  { %v257_v6 = vsel %vm252_vm5, %v240_v58, %v196_v2 }
  0x96   :  { %1247 = vmatmul.msk.f32.gmra.mxu3 %vm235_vm4, %v814_v7 }
  0x97   :  { %v1274_v57 = vpop.permute.xlu0 %1273 }
  0x98   :  { %v1275_v62 = vunpack.i.l.bf16 %v1274_v57  ;;  %v1276_v3 = vunpack.i.h.bf16 %v1274_v57  ;;  %v157_v36 = vpop.permute.xlu2 %156 }
  0x99   :  { %1227 = vmatmul.msk.f32.gmra.mxu0 %vm285_vm6, %v256_v56  ;;  %v245_v2 = vsel %vm235_vm4, %v1470_v63, %v157_v36  ;;  %v825_v63 = vrot.slane %v1622_v17, 4  ;;  %v1865_v36 = vld [vmem:[%s2102_s5] ss:$0 sm:$0xff] }
  0x9a   :  { %651 = vmatmul.f32.gmra.mxu1 %v593_v59  ;;  %914 = vmatmul.f32.gmra.mxu2 %v593_v59  ;;  %v149_v61 = vpop.permute.xlu1 %148  ;;  %v594_v8 = vsel %vm285_vm6, %v257_v6, %v1275_v62 }
  0x9b   :  { %v241_v13 = vsel %vm235_vm4, %v1413_v33, %v149_v61  ;;  %v817_v33 = vrot.slane %v1486_v10, 4  ;;  %v826_v61 = vsel %vm797_vm3, %v823_v48, %v825_v63 }
  0x9c   :  { %v258_v19 = vsel %vm252_vm5, %v241_v13, %v198_v4  ;;  %v827_v4 = vrot.slane %v1668_v38, 4 }
  0x9d   :  { %v595_v22 = vsel %vm285_vm6, %v258_v19, %v1276_v3  ;;  %v818_v26 = vsel %vm797_vm3, %v815_v12, %v817_v33  ;;  %v820_v31 = vsel %vm797_vm3, %v817_v33, %v819_v29 }
  0x9e   :  { %1248 = vmatmul.msk.f32.gmra.mxu3 %vm235_vm4, %v816_v18  ;;  %v831_v15 = vsel %vm797_vm3, %v827_v4, %v798_v50 }
  0x9f   :  { %v151_v11 = vpop.permute.xlu0 %150 }
  0xa0   :  { %v242_v5 = vsel %vm235_vm4, %v1418_v34, %v151_v11  ;;  %v208_v47 = vpop.permute.xlu2 %207 }
  0xa1   :  { %1228 = vmatmul.msk.f32.gmra.mxu0 %vm285_vm6, %v257_v6 }
  0xa2   :  { %654 = vmatmul.f32.gmra.mxu1 %v594_v8  ;;  %917 = vmatmul.f32.gmra.mxu2 %v594_v8  ;;  %v200_v20 = vpop.permute.xlu1 %199  ;;  %v828_v8 = vsel %vm797_vm3, %v825_v63, %v827_v4 }
  0xa3   :  { %v259_v25 = vsel %vm252_vm5, %v242_v5, %v200_v20 }
  0xa4   :  { %v596_v28 = vsel %vm285_vm6, %v259_v25, %v1280_v23 }
  0xa6   :  { %1249 = vmatmul.msk.f32.gmra.mxu3 %vm235_vm4, %v818_v26 }
  0xa7   :  { %v153_v21 = vpop.permute.xlu0 %152 }
  0xa8   :  { %v243_v14 = vsel %vm235_vm4, %v1438_v46, %v153_v21  ;;  %v821_v46 = vrot.slane %v1591_v60, 4  ;;  %v210_v57 = vpop.permute.xlu2 %209 }
  0xa9   :  { %1229 = vmatmul.msk.f32.gmra.mxu0 %vm285_vm6, %v258_v19 }
  0xaa   :  { %657 = vmatmul.f32.gmra.mxu1 %v595_v22  ;;  %920 = vmatmul.f32.gmra.mxu2 %v595_v22  ;;  %v202_v24 = vpop.permute.xlu1 %201  ;;  %v822_v44 = vsel %vm797_vm3, %v819_v29, %v821_v46  ;;  %v824_v49 = vsel %vm797_vm3, %v821_v46, %v823_v48  ;;  %vm1194_vm3 = vcmask 195584  }
  0xab   :  { %v260_v35 = vsel %vm252_vm5, %v243_v14, %v202_v24 }
  0xac   :  { %v597_v39 = vsel %vm285_vm6, %v260_v35, %v1281_v32 }
  0xae   :  { %1250 = vmatmul.msk.f32.gmra.mxu3 %vm235_vm4, %v820_v31 }
  0xaf   :  { %v204_v34 = vpop.permute.xlu0 %203 }
  0xb0   :  { %v261_v1 = vsel %vm252_vm5, %v244_v37, %v204_v34  ;;  %v212_v6 = vpop.permute.xlu2 %211  ;;  %v1870_v37 = vld [vmem:[%s2103_s6] ss:$0 sm:$0xff] }
  0xb1   :  { %1230 = vmatmul.msk.f32.gmra.mxu0 %vm285_vm6, %v259_v25 }
  0xb2   :  { %660 = vmatmul.f32.gmra.mxu1 %v596_v28  ;;  %923 = vmatmul.f32.gmra.mxu2 %v596_v28  ;;  %v1284_v30 = vpop.permute.xlu1 %1283 }
  0xb3   :  { %v1285_v42 = vunpack.i.l.bf16 %v1284_v30  ;;  %v1286_v51 = vunpack.i.h.bf16 %v1284_v30  ;;  %v48_v30 = vlaneseq }
  0xb5   :  { %v598_v45 = vsel %vm285_vm6, %v261_v1, %v1285_v42 }
  0xb6   :  { %1251 = vmatmul.msk.f32.gmra.mxu3 %vm235_vm4, %v822_v44 }
  0xb7   :  { %v206_v40 = vpop.permute.xlu0 %205 }
  0xb8   :  { %v262_v53 = vsel %vm252_vm5, %v245_v2, %v206_v40  ;;  %v214_v18 = vpop.permute.xlu2 %213 }
  0xb9   :  { %1231 = vmatmul.msk.f32.gmra.mxu0 %vm285_vm6, %v260_v35  ;;  %v599_v55 = vsel %vm285_vm6, %v262_v53, %v1286_v51  ;;  %v49_v35 = vshrl.u32 %v48_v30, 7 }
  0xba   :  { %663 = vmatmul.f32.gmra.mxu1 %v597_v39  ;;  %926 = vmatmul.f32.gmra.mxu2 %v597_v39  ;;  %v159_v43 = vpop.permute.xlu1 %158 }
  0xbb   :  { %v246_v56 = vsel %vm235_vm4, %v1486_v10, %v159_v43  ;;  %v1873_v40 = vadd.s32 8, %v49_v35 }
  0xbc   :  { %v263_v58 = vsel %vm252_vm5, %v246_v56, %v208_v47 }
  0xbd   :  { %vm416_vm7 = vcmp.lt.s32.totalorder %v1873_v40, 14  ;;  %vm708_vm9 = vcmp.lt.s32.totalorder %v1873_v40, 13  ;;  %vm1036_vm10 = vcmp.lt.s32.totalorder %v1873_v40, 12 }
  0xbe   :  { %1252 = vmatmul.msk.f32.gmra.mxu3 %vm235_vm4, %v824_v49 }
  0xbf   :  { %v563_v52 = vpop.permute.xlu0 %562 }
  0xc0   :  { %v600_v16 = vsel %vm285_vm6, %v263_v58, %v563_v52  ;;  %v216_v22 = vpop.permute.xlu2 %215 }
  0xc1   :  { %1232 = vmatmul.msk.f32.gmra.mxu0 %vm285_vm6, %v261_v1 }
  0xc2   :  { %666 = vmatmul.f32.gmra.mxu1 %v598_v45  ;;  %929 = vmatmul.f32.gmra.mxu2 %v598_v45  ;;  %v161_v54 = vpop.permute.xlu1 %160 }
  0xc3   :  { %v247_v10 = vsel %vm235_vm4, %v1547_v41, %v161_v54 }
  0xc4   :  { %v264_v7 = vsel %vm252_vm5, %v247_v10, %v210_v57 }
  0xc6   :  { %1253 = vmatmul.msk.f32.gmra.mxu3 %vm235_vm4, %v826_v61 }
  0xc7   :  { %v565_v59 = vpop.permute.xlu0 %564 }
  0xc8   :  { %v601_v20 = vsel %vm285_vm6, %v264_v7, %v565_v59  ;;  %v218_v27 = vpop.permute.xlu2 %217 }
  0xc9   :  { %1233 = vmatmul.msk.f32.gmra.mxu0 %vm285_vm6, %v262_v53 }
  0xca   :  { %669 = vmatmul.f32.gmra.mxu1 %v599_v55  ;;  %932 = vmatmul.f32.gmra.mxu2 %v599_v55  ;;  %v163_v62 = vpop.permute.xlu1 %162 }
  0xcb   :  { %v248_v12 = vsel %vm235_vm4, %v1591_v60, %v163_v62  ;;  %v971_v23 = vpop.f32.mrf.mxu3 }
  0xcc   :  { %v265_v13 = vsel %vm252_vm5, %v248_v12, %v212_v6 }
  0xce   :  { %1254 = vmatmul.msk.f32.gmra.mxu3 %vm235_vm4, %v828_v8 }
  0xcf   :  { %v567_v11 = vpop.permute.xlu0 %566 }
  0xd0   :  { %v602_v3 = vsel %vm285_vm6, %v265_v13, %v567_v11 }
  0xd1   :  { %1234 = vmatmul.msk.f32.gmra.mxu0 %vm285_vm6, %v263_v58 }
  0xd2   :  { %672 = vmatmul.f32.gmra.mxu1 %v600_v16  ;;  %935 = vmatmul.f32.gmra.mxu2 %v600_v16  ;;  %v165_v41 = vpop.permute.xlu1 %164 }
  0xd3   :  { %v249_v60 = vsel %vm235_vm4, %v1611_v9, %v165_v41  ;;  %v974_v28 = vpop.f32.mrf.mxu3 }
  0xd4   :  { %v266_v21 = vsel %vm252_vm5, %v249_v60, %v214_v18 }
  0xd6   :  { %1255 = vmatmul.msk.f32.gmra.mxu3 %vm235_vm4, %v831_v15 }
  0xd7   :  { %v569_v19 = vpop.permute.xlu0 %568 }
  0xd8   :  { %v603_v0 = vsel %vm285_vm6, %v266_v21, %v569_v19 }
  0xd9   :  { %1235 = vmatmul.msk.f32.gmra.mxu0 %vm285_vm6, %v264_v7 }
  0xda   :  { %675 = vmatmul.f32.gmra.mxu1 %v601_v20  ;;  %938 = vmatmul.f32.gmra.mxu2 %v601_v20  ;;  %v167_v5 = vpop.permute.xlu1 %166 }
  0xdb   :  { %v250_v50 = vsel %vm235_vm4, %v1622_v17, %v167_v5  ;;  %v977_v14 = vpop.f32.mrf.mxu3 }
  0xdc   :  { %v267_v24 = vsel %vm252_vm5, %v250_v50, %v216_v22 }
  0xdf   :  { %v571_v33 = vpop.permute.xlu0 %570 }
  0xe0   :  { %v604_v25 = vsel %vm285_vm6, %v267_v24, %v571_v33 }
  0xe1   :  { %1236 = vmatmul.msk.f32.gmra.mxu0 %vm285_vm6, %v265_v13 }
  0xe2   :  { %678 = vmatmul.f32.gmra.mxu1 %v602_v3  ;;  %941 = vmatmul.f32.gmra.mxu2 %v602_v3  ;;  %v169_v9 = vpop.permute.xlu1 %168 }
  0xe3   :  { %v251_v26 = vsel %vm235_vm4, %v1668_v38, %v169_v9  ;;  %v1860_v38 = vld [vmem:[%s2101_s4] ss:$0 sm:$0xff]  ;;  %v1876_v1 = vpop.f32.mrf.mxu3  ;;  %vm1218_vm4 = vcmask 31744  }
  0xe4   :  { %v268_v17 = vsel %vm252_vm5, %v251_v26, %v218_v27 }
  0xe7   :  { %v573_v34 = vpop.permute.xlu0 %572 }
  0xe8   :  { %v605_v29 = vsel %vm285_vm6, %v268_v17, %v573_v34 }
  0xe9   :  { %1237 = vmatmul.msk.f32.gmra.mxu0 %vm285_vm6, %v266_v21 }
  0xea   :  { %681 = vmatmul.f32.gmra.mxu1 %v603_v0  ;;  %944 = vmatmul.f32.gmra.mxu2 %v603_v0 }
  0xeb   :  { %v1892_v6 = vpop.f32.mrf.mxu3 }
  0xf1   :  { %1238 = vmatmul.msk.f32.gmra.mxu0 %vm285_vm6, %v267_v24 }
  0xf2   :  { %684 = vmatmul.f32.gmra.mxu1 %v604_v25  ;;  %947 = vmatmul.f32.gmra.mxu2 %v604_v25 }
  0xf9   :  { %1239 = vmatmul.msk.f32.gmra.mxu0 %vm285_vm6, %v268_v17 }
  0xfa   :  { %687 = vmatmul.f32.gmra.mxu1 %v605_v29  ;;  %950 = vmatmul.f32.gmra.mxu2 %v605_v29 }
  0xfe   :  { %v351_v31 = vpop.f32.mrf.mxu0 }
  0xff   :  { %v643_v32 = vpop.f32.mrf.mxu1  ;;  %v352_v39 = vadd.f32 %v1860_v38, %v351_v31 }
 0x100   :  { %v644_v46 = vadd.f32 %v1865_v36, %v643_v32 }
 0x101   :  { %v399_v52 = vmax.f32 %v352_v39, 0.0 }
 0x102   :  { %v691_v49 = vmax.f32 %v644_v46, 0.0 }
 0x103   :  { %v434_v55 = vsel %vm433_vm8, %v399_v52, -inf }
 0x104   :  { %v725_v63 = vsel %vm433_vm8, %v691_v49, -inf }
 0x105   :  { %v906_v42 = vpop.f32.mrf.mxu2 }
 0x106   :  { %v907_v43 = vadd.f32 %v1870_v37, %v906_v42  ;;  %v354_v44 = vpop.f32.mrf.mxu0 }
 0x107   :  { %v355_v45 = vadd.f32 %v1860_v38, %v354_v44  ;;  %v646_v47 = vpop.f32.mrf.mxu1 }
 0x108   :  { %v647_v48 = vadd.f32 %v1865_v36, %v646_v47  ;;  %v972_v2 = vadd.f32 %v971_v23, %v907_v43 }
 0x109   :  { %v400_v51 = vmax.f32 %v355_v45, 0.0  ;;  %v1904_v26 = vpop.f32.mrf.mxu3 }
 0x10a   :  { %v692_v53 = vmax.f32 %v647_v48, 0.0  ;;  %v1019_v8 = vmax.f32 %v972_v2, 0.0 }
 0x10b   :  { %v418_v54 = vsel %vm416_vm7, %v400_v51, 0.0 }
 0x10c   :  { %v435_v56 = vsel %vm433_vm8, %v418_v54, -inf  ;;  %v710_v57 = vsel %vm708_vm9, %v692_v53, 0.0  ;;  %v1053_v13 = vsel %vm433_vm8, %v1019_v8, -inf }
 0x10d   :  { %v436_v58 = vmax.f32 %v434_v55, %v435_v56  ;;  %v726_v59 = vsel %vm433_vm8, %v710_v57, -inf  ;;  %v909_v61 = vpop.f32.mrf.mxu2 }
 0x10e   :  { %v727_v16 = vmax.f32 %v725_v63, %v726_v59  ;;  %v910_v62 = vadd.f32 %v1870_v37, %v909_v61  ;;  %v357_v10 = vpop.f32.mrf.mxu0 }
 0x10f   :  { %v649_v4 = vpop.f32.mrf.mxu1  ;;  %v437_v20 = vrot.slane %v436_v58, 4  ;;  %v358_v12 = vadd.f32 %v1860_v38, %v357_v10 }
 0x110   :  { %v975_v7 = vadd.f32 %v974_v28, %v910_v62  ;;  %v650_v15 = vadd.f32 %v1865_v36, %v649_v4  ;;  %v728_v5 = vrot.slane %v727_v16, 4 }
 0x111   :  { %v438_v50 = vmax.f32 %v436_v58, %v437_v20  ;;  %v401_v33 = vmax.f32 %v358_v12, 0.0  ;;  %v1917_v59 = vpop.f32.mrf.mxu3 }
 0x112   :  { %v1020_v11 = vmax.f32 %v975_v7, 0.0  ;;  %v693_v9 = vmax.f32 %v650_v15, 0.0  ;;  %v729_v28 = vmax.f32 %v727_v16, %v728_v5 }
 0x113   :  { %v439_v17 = vrot.slane %v438_v50, 2  ;;  %v443_v29 = vsel %vm433_vm8, %v401_v33, -inf }
 0x114   :  { %v1038_v41 = vsel %vm1036_vm10, %v1020_v11, 0.0  ;;  %v734_v32 = vsel %vm433_vm8, %v693_v9, -inf  ;;  %v730_v45 = vrot.slane %v729_v28, 2 }
 0x115   :  { %v1054_v18 = vsel %vm433_vm8, %v1038_v41, -inf  ;;  %v912_v3 = vpop.f32.mrf.mxu2  ;;  %v440_v48 = vmax.f32 %v438_v50, %v439_v17 }
 0x116   :  { %v1055_v19 = vmax.f32 %v1053_v13, %v1054_v18  ;;  %v913_v60 = vadd.f32 %v1870_v37, %v912_v3  ;;  %v360_v21 = vpop.f32.mrf.mxu0  ;;  %v731_v57 = vmax.f32 %v729_v28, %v730_v45 }
 0x117   :  { %v361_v0 = vadd.f32 %v1860_v38, %v360_v21  ;;  %v652_v22 = vpop.f32.mrf.mxu1  ;;  %v441_v61 = vrot.slane %v440_v48, 1 }
 0x118   :  { %v653_v23 = vadd.f32 %v1865_v36, %v652_v22  ;;  %v978_v24 = vadd.f32 %v977_v14, %v913_v60  ;;  %v1056_v46 = vrot.slane %v1055_v19, 4  ;;  %v732_v15 = vrot.slane %v731_v57, 1 }
 0x119   :  { %v402_v25 = vmax.f32 %v361_v0, 0.0  ;;  %v442_v50 = vmax.f32 %v440_v48, %v441_v61 }
 0x11a   :  { %v694_v27 = vmax.f32 %v653_v23, 0.0  ;;  %v1021_v53 = vmax.f32 %v978_v24, 0.0  ;;  %v1057_v54 = vmax.f32 %v1055_v19, %v1056_v46 }
 0x11b   :  { %v420_v34 = vsel %vm416_vm7, %v402_v25, 0.0 }
 0x11c   :  { %v444_v30 = vsel %vm433_vm8, %v420_v34, -inf  ;;  %v712_v31 = vsel %vm708_vm9, %v694_v27, 0.0  ;;  %v1058_v11 = vrot.slane %v1057_v54, 2  ;;  %v733_v34 = vmax.f32 %v731_v57, %v732_v15 }
 0x11d   :  { %v445_v14 = vmax.f32 %v443_v29, %v444_v30  ;;  %v735_v35 = vsel %vm433_vm8, %v712_v31, -inf  ;;  %v915_v39 = vpop.f32.mrf.mxu2 }
 0x11e   :  { %v736_v42 = vmax.f32 %v734_v32, %v735_v35  ;;  %v916_v43 = vadd.f32 %v1870_v37, %v915_v39  ;;  %v363_v44 = vpop.f32.mrf.mxu0  ;;  %v1059_v9 = vmax.f32 %v1057_v54, %v1058_v11 }
 0x11f   :  { %v446_v47 = vrot.slane %v445_v14, 4  ;;  %v655_v52 = vpop.f32.mrf.mxu1  ;;  %v364_v58 = vadd.f32 %v1860_v38, %v363_v44 }
 0x120   :  { %v737_v2 = vrot.slane %v736_v42, 4  ;;  %v981_v49 = vadd.f32 %v1876_v1, %v916_v43  ;;  %v1062_v1 = vsel %vm433_vm8, %v1021_v53, -inf  ;;  %v656_v4 = vadd.f32 %v1865_v36, %v655_v52 }
 0x121   :  { %v447_v51 = vmax.f32 %v445_v14, %v446_v47  ;;  %v403_v3 = vmax.f32 %v364_v58, 0.0  ;;  %v1060_v44 = vrot.slane %v1059_v9, 1 }
 0x122   :  { %v738_v55 = vmax.f32 %v736_v42, %v737_v2  ;;  %v1022_v56 = vmax.f32 %v981_v49, 0.0  ;;  %v695_v23 = vmax.f32 %v656_v4, 0.0  ;;  %v1937_v42 = vpop.f32.mrf.mxu3 }
 0x123   :  { %v448_v63 = vrot.slane %v447_v51, 2  ;;  %v452_v30 = vsel %vm433_vm8, %v403_v3, -inf  ;;  %v1061_v57 = vmax.f32 %v1059_v9, %v1060_v44 }
 0x124   :  { %v739_v16 = vrot.slane %v738_v55, 2  ;;  %v1040_v62 = vsel %vm1036_vm10, %v1022_v56, 0.0  ;;  %v743_v14 = vsel %vm433_vm8, %v695_v23, -inf }
 0x125   :  { %v449_v10 = vmax.f32 %v447_v51, %v448_v63  ;;  %v1063_v7 = vsel %vm433_vm8, %v1040_v62, -inf  ;;  %v918_v8 = vpop.f32.mrf.mxu2 }
 0x126   :  { %v740_v20 = vmax.f32 %v738_v55, %v739_v16  ;;  %v1064_v12 = vmax.f32 %v1062_v1, %v1063_v7  ;;  %v919_v41 = vadd.f32 %v1870_v37, %v918_v8  ;;  %v366_v13 = vpop.f32.mrf.mxu0 }
 0x127   :  { %v450_v18 = vrot.slane %v449_v10, 1  ;;  %v367_v19 = vadd.f32 %v1860_v38, %v366_v13  ;;  %v658_v60 = vpop.f32.mrf.mxu1 }
 0x128   :  { %v741_v21 = vrot.slane %v740_v20, 1  ;;  %v1065_v5 = vrot.slane %v1064_v12, 4  ;;  %v659_v0 = vadd.f32 %v1865_v36, %v658_v60  ;;  %v984_v22 = vadd.f32 %v1892_v6, %v919_v41 }
 0x129   :  { %v451_v33 = vmax.f32 %v449_v10, %v450_v18  ;;  %v404_v24 = vmax.f32 %v367_v19, 0.0 }
 0x12a   :  { %v742_v25 = vmax.f32 %v740_v20, %v741_v21  ;;  %v1066_v27 = vmax.f32 %v1064_v12, %v1065_v5  ;;  %v696_v28 = vmax.f32 %v659_v0, 0.0  ;;  %v1023_v56 = vmax.f32 %v984_v22, 0.0  ;;  %v1951_v21 = vpop.f32.mrf.mxu3 }
 0x12b   :  { %v1134_v17 = vsel %vm1133_vm11, %v451_v33, %v442_v50  ;;  %v422_v29 = vsel %vm416_vm7, %v404_v24, 0.0 }
 0x12c   :  { %v1067_v31 = vrot.slane %v1066_v27, 2  ;;  %v453_v32 = vsel %vm433_vm8, %v422_v29, -inf  ;;  %v714_v6 = vsel %vm708_vm9, %v696_v28, 0.0  ;;  %v1156_v43 = vsel %vm1133_vm11, %v742_v25, %v733_v34 }
 0x12d   :  { %v454_v35 = vmax.f32 %v452_v30, %v453_v32  ;;  %v744_v39 = vsel %vm433_vm8, %v714_v6, -inf  ;;  %v921_v46 = vpop.f32.mrf.mxu2  ;;  %v1071_v8 = vsel %vm433_vm8, %v1023_v56, -inf }
 0x12e   :  { %v1068_v45 = vmax.f32 %v1066_v27, %v1067_v31  ;;  %v745_v47 = vmax.f32 %v743_v14, %v744_v39  ;;  %v922_v52 = vadd.f32 %v1870_v37, %v921_v46  ;;  %v369_v48 = vpop.f32.mrf.mxu0 }
 0x12f   :  { %v455_v2 = vrot.slane %v454_v35, 4  ;;  %v661_v49 = vpop.f32.mrf.mxu1  ;;  %v370_v62 = vadd.f32 %v1860_v38, %v369_v48 }
 0x130   :  { %v1069_v51 = vrot.slane %v1068_v45, 1  ;;  %v746_v53 = vrot.slane %v745_v47, 4  ;;  %v987_v54 = vadd.f32 %v1904_v26, %v922_v52  ;;  %v662_v26 = vadd.f32 %v1865_v36, %v661_v49 }
 0x131   :  { %v456_v55 = vmax.f32 %v454_v35, %v455_v2  ;;  %v405_v3 = vmax.f32 %v370_v62, 0.0 }
 0x132   :  { %v1070_v63 = vmax.f32 %v1068_v45, %v1069_v51  ;;  %v747_v58 = vmax.f32 %v745_v47, %v746_v53  ;;  %v1024_v61 = vmax.f32 %v987_v54, 0.0  ;;  %v697_v23 = vmax.f32 %v662_v26, 0.0  ;;  %v1969_v54 = vpop.f32.mrf.mxu3 }
 0x133   :  { %v457_v16 = vrot.slane %v456_v55, 2  ;;  %v461_v29 = vsel %vm433_vm8, %v405_v3, -inf }
 0x134   :  { %v748_v10 = vrot.slane %v747_v58, 2  ;;  %v1042_v1 = vsel %vm1036_vm10, %v1024_v61, 0.0  ;;  %v1174_v4 = vsel %vm1133_vm11, %v1070_v63, %v1061_v57 }
 0x135   :  { %v458_v7 = vmax.f32 %v456_v55, %v457_v16  ;;  %v1072_v11 = vsel %vm433_vm8, %v1042_v1, -inf  ;;  %v924_v20 = vpop.f32.mrf.mxu2 }
 0x136   :  { %v749_v12 = vmax.f32 %v747_v58, %v748_v10  ;;  %v1073_v41 = vmax.f32 %v1071_v8, %v1072_v11  ;;  %v925_v13 = vadd.f32 %v1870_v37, %v924_v20  ;;  %v372_v15 = vpop.f32.mrf.mxu0 }
 0x137   :  { %v459_v18 = vrot.slane %v458_v7, 1  ;;  %v373_v19 = vadd.f32 %v1860_v38, %v372_v15  ;;  %v664_v60 = vpop.f32.mrf.mxu1 }
 0x138   :  { %v750_v5 = vrot.slane %v749_v12, 1  ;;  %v1074_v0 = vrot.slane %v1073_v41, 4  ;;  %v665_v22 = vadd.f32 %v1865_v36, %v664_v60  ;;  %v990_v50 = vadd.f32 %v1917_v59, %v925_v13 }
 0x139   :  { %v460_v33 = vmax.f32 %v458_v7, %v459_v18  ;;  %v406_v24 = vmax.f32 %v373_v19, 0.0  ;;  %v752_v59 = vsel %vm433_vm8, %v697_v23, -inf }
 0x13a   :  { %v751_v9 = vmax.f32 %v749_v12, %v750_v5  ;;  %v1075_v25 = vmax.f32 %v1073_v41, %v1074_v0  ;;  %v698_v27 = vmax.f32 %v665_v22, 0.0  ;;  %v1025_v53 = vmax.f32 %v990_v50, 0.0  ;;  %v1982_v5 = vpop.f32.mrf.mxu3 }
 0x13b   :  { %v424_v28 = vsel %vm416_vm7, %v406_v24, 0.0  ;;  %v1136_v34 = vsel %vm1135_vm12, %v460_v33, %v1134_v17 }
 0x13c   :  { %v1076_v30 = vrot.slane %v1075_v25, 2  ;;  %v462_v31 = vsel %vm433_vm8, %v424_v28, -inf  ;;  %v716_v32 = vsel %vm708_vm9, %v698_v27, 0.0  ;;  %v1157_v39 = vsel %vm1135_vm12, %v751_v9, %v1156_v43 }
 0x13d   :  { %v463_v6 = vmax.f32 %v461_v29, %v462_v31  ;;  %v753_v14 = vsel %vm433_vm8, %v716_v32, -inf  ;;  %v927_v35 = vpop.f32.mrf.mxu2  ;;  %v1080_v10 = vsel %vm433_vm8, %v1025_v53, -inf }
 0x13e   :  { %v1077_v46 = vmax.f32 %v1075_v25, %v1076_v30  ;;  %v754_v44 = vmax.f32 %v752_v59, %v753_v14  ;;  %v928_v17 = vadd.f32 %v1870_v37, %v927_v35  ;;  %v375_v45 = vpop.f32.mrf.mxu0 }
 0x13f   :  { %v464_v47 = vrot.slane %v463_v6, 4  ;;  %v1966_v52 = vpop.f32.mrf.mxu1  ;;  %v376_v58 = vadd.f32 %v1860_v38, %v375_v45 }
 0x140   :  { %v1078_v48 = vrot.slane %v1077_v46, 1  ;;  %v755_v2 = vrot.slane %v754_v44, 4  ;;  %v993_v49 = vadd.f32 %v1937_v42, %v928_v17 }
 0x141   :  { %v465_v51 = vmax.f32 %v463_v6, %v464_v47  ;;  %v407_v13 = vmax.f32 %v376_v58, 0.0 }
 0x142   :  { %v1079_v55 = vmax.f32 %v1077_v46, %v1078_v48  ;;  %v756_v56 = vmax.f32 %v754_v44, %v755_v2  ;;  %v1026_v57 = vmax.f32 %v993_v49, 0.0  ;;  %v1004_v46 = vpop.f32.mrf.mxu3 }
 0x143   :  { %v466_v43 = vrot.slane %v465_v51, 2  ;;  %v470_v22 = vsel %vm433_vm8, %v407_v13, -inf }
 0x144   :  { %v757_v63 = vrot.slane %v756_v56, 2  ;;  %v1044_v61 = vsel %vm1036_vm10, %v1026_v57, 0.0  ;;  %v1175_v16 = vsel %vm1135_vm12, %v1079_v55, %v1174_v4 }
 0x145   :  { %v467_v62 = vmax.f32 %v465_v51, %v466_v43  ;;  %v1081_v42 = vsel %vm433_vm8, %v1044_v61, -inf  ;;  %v1977_v1 = vpop.f32.mrf.mxu2  ;;  %v668_v43 = vadd.f32 %v1865_v36, %v1966_v52 }
 0x146   :  { %v758_v7 = vmax.f32 %v756_v56, %v757_v63  ;;  %v1082_v8 = vmax.f32 %v1080_v10, %v1081_v42  ;;  %v378_v26 = vpop.f32.mrf.mxu0 }
 0x147   :  { %v468_v11 = vrot.slane %v467_v62, 1  ;;  %v379_v20 = vadd.f32 %v1860_v38, %v378_v26  ;;  %v670_v12 = vpop.f32.mrf.mxu1 }
 0x148   :  { %v759_v41 = vrot.slane %v758_v7, 1  ;;  %v1083_v15 = vrot.slane %v1082_v8, 4  ;;  %v671_v47 = vadd.f32 %v1865_v36, %v670_v12 }
 0x149   :  { %v469_v18 = vmax.f32 %v467_v62, %v468_v11  ;;  %v408_v4 = vmax.f32 %v379_v20, 0.0  ;;  %v931_v20 = vadd.f32 %v1870_v37, %v1977_v1 }
 0x14a   :  { %v760_v3 = vmax.f32 %v758_v7, %v759_v41  ;;  %v1084_v19 = vmax.f32 %v1082_v8, %v1083_v15  ;;  %v700_v55 = vmax.f32 %v671_v47, 0.0  ;;  %v1007_v10 = vpop.f32.mrf.mxu3  ;;  %v699_v8 = vmax.f32 %v668_v43, 0.0 }
 0x14b   :  { %v426_v60 = vsel %vm416_vm7, %v408_v4, 0.0  ;;  %v1138_v0 = vsel %vm1137_vm13, %v469_v18, %v1136_v34 }
 0x14c   :  { %v1085_v50 = vrot.slane %v1084_v19, 2  ;;  %v471_v33 = vsel %vm433_vm8, %v426_v60, -inf  ;;  %v1988_v9 = vsel %vm1137_vm13, %v760_v3, %v1157_v39  ;;  %v718_v42 = vsel %vm708_vm9, %v700_v55, 0.0 }
 0x14d   :  { %v472_v23 = vmax.f32 %v470_v22, %v471_v33  ;;  %v933_v24 = vpop.f32.mrf.mxu2  ;;  %v762_v52 = vsel %vm433_vm8, %v718_v42, -inf  ;;  %v761_v4 = vsel %vm433_vm8, %v699_v8, -inf  ;;  %v996_v22 = vadd.f32 %v1951_v21, %v931_v20 }
 0x14e   :  { %v1086_v25 = vmax.f32 %v1084_v19, %v1085_v50  ;;  %v381_v27 = vpop.f32.mrf.mxu0  ;;  %v934_v26 = vadd.f32 %v1870_v37, %v933_v24 }
 0x14f   :  { %v473_v28 = vrot.slane %v472_v23, 4  ;;  %v673_v29 = vpop.f32.mrf.mxu1  ;;  %v382_v34 = vadd.f32 %v1860_v38, %v381_v27  ;;  %v1027_v42 = vmax.f32 %v996_v22, 0.0 }
 0x150   :  { %v1087_v30 = vrot.slane %v1086_v25, 1  ;;  %v674_v12 = vadd.f32 %v1865_v36, %v673_v29  ;;  %v999_v3 = vadd.f32 %v1969_v54, %v934_v26 }
 0x151   :  { %v474_v31 = vmax.f32 %v472_v23, %v473_v28  ;;  %v409_v48 = vmax.f32 %v382_v34, 0.0 }
 0x152   :  { %v1088_v32 = vmax.f32 %v1086_v25, %v1087_v30  ;;  %v701_v33 = vmax.f32 %v674_v12, 0.0  ;;  %v1028_v30 = vmax.f32 %v999_v3, 0.0 }
 0x153   :  { %v475_v59 = vrot.slane %v474_v31, 2  ;;  %v479_v56 = vsel %vm433_vm8, %v409_v48, -inf }
 0x154   :  { %v1992_v6 = vsel %vm1137_vm13, %v1088_v32, %v1175_v16  ;;  %v1046_v55 = vsel %vm1036_vm10, %v1028_v30, 0.0 }
 0x155   :  { %v476_v14 = vmax.f32 %v474_v31, %v475_v59  ;;  %v936_v35 = vpop.f32.mrf.mxu2  ;;  %v1010_v59 = vpop.f32.mrf.mxu3  ;;  %v1090_v20 = vsel %vm433_vm8, %v1046_v55, -inf }
 0x156   :  { %v384_v44 = vpop.f32.mrf.mxu0  ;;  %v937_v31 = vadd.f32 %v1870_v37, %v936_v35 }
 0x157   :  { %v477_v17 = vrot.slane %v476_v14, 1  ;;  %v385_v39 = vadd.f32 %v1860_v38, %v384_v44  ;;  %v676_v45 = vpop.f32.mrf.mxu1 }
 0x158   :  { %v677_v7 = vadd.f32 %v1865_v36, %v676_v45 }
 0x159   :  { %v478_v2 = vmax.f32 %v476_v14, %v477_v17  ;;  %v410_v49 = vmax.f32 %v385_v39, 0.0  ;;  %v770_v39 = vsel %vm433_vm8, %v701_v33, -inf }
 0x15a   :  { %v702_v13 = vmax.f32 %v677_v7, 0.0 }
 0x15b   :  { %v428_v51 = vsel %vm416_vm7, %v410_v49, 0.0  ;;  %v1140_v53 = vsel %vm1139_vm14, %v478_v2, %v1138_v0  ;;  %v763_v0 = vmax.f32 %v761_v4, %v762_v52 }
 0x15c   :  { %v480_v57 = vsel %vm433_vm8, %v428_v51, -inf  ;;  %v720_v27 = vsel %vm708_vm9, %v702_v13, 0.0  ;;  %v1189_v51 = vld [vmem:[%s2104_s7 + $0x10] sm:$0xff] }
 0x15d   :  { %v481_v63 = vmax.f32 %v479_v56, %v480_v57  ;;  %v939_v58 = vpop.f32.mrf.mxu2  ;;  %v764_v34 = vrot.slane %v763_v0, 4  ;;  %v771_v45 = vsel %vm433_vm8, %v720_v27, -inf  ;;  %v1002_v56 = vadd.f32 %v1982_v5, %v937_v31  ;;  %1211 = vmatpush.msrb.mxu3 %v1189_v51  ;;  %v1188_v27 = vld [vmem:[%s2104_s7 + $0x8] sm:$0xff] }
 0x15e   :  { %v387_v61 = vpop.f32.mrf.mxu0  ;;  %v940_v15 = vadd.f32 %v1870_v37, %v939_v58 }
 0x15f   :  { %v482_v16 = vrot.slane %v481_v63, 4  ;;  %v679_v62 = vpop.f32.mrf.mxu1  ;;  %v388_v18 = vadd.f32 %v1860_v38, %v387_v61  ;;  %v1029_v52 = vmax.f32 %v1002_v56, 0.0  ;;  %1212 = vmatpush.msrb.mxu3 %v1188_v27 }
 0x160   :  { %v680_v1 = vadd.f32 %v1865_v36, %v679_v62  ;;  %v1005_v29 = vadd.f32 %v1004_v46, %v940_v15 }
 0x161   :  { %v483_v11 = vmax.f32 %v481_v63, %v482_v16  ;;  %v411_v28 = vmax.f32 %v388_v18, 0.0  ;;  %v772_v63 = vmax.f32 %v770_v39, %v771_v45  ;;  %v1098_v33 = vsel %vm433_vm8, %v1029_v52, -inf }
 0x162   :  { %v703_v14 = vmax.f32 %v680_v1, 0.0  ;;  %v1030_v48 = vmax.f32 %v1005_v29, 0.0 }
 0x163   :  { %v484_v41 = vrot.slane %v483_v11, 2  ;;  %v488_v35 = vsel %vm433_vm8, %v411_v28, -inf  ;;  %v773_v13 = vrot.slane %v772_v63, 4  ;;  %v1187_v28 = vld [vmem:[%s2104_s7] sm:$0xff]  ;;  %s1294_s7 = smov 8  }
 0x164   :  { %v779_v58 = vsel %vm433_vm8, %v703_v14, -inf  ;;  %1213 = vmatpush.msrb.mxu3 %v1187_v28 }
 0x165   :  { %v485_v19 = vmax.f32 %v483_v11, %v484_v41  ;;  %v942_v60 = vpop.f32.mrf.mxu2  ;;  %v1048_v11 = vsel %vm1036_vm10, %v1030_v48, 0.0  ;;  %v765_v41 = vmax.f32 %v763_v0, %v764_v34 }
 0x166   :  { %v390_v50 = vpop.f32.mrf.mxu0  ;;  %v943_v44 = vadd.f32 %v1870_v37, %v942_v60  ;;  %v1099_v4 = vsel %vm433_vm8, %v1048_v11, -inf  ;;  %v1013_v60 = vpop.f32.mrf.mxu3 }
 0x167   :  { %v486_v23 = vrot.slane %v485_v19, 1  ;;  %v391_v24 = vadd.f32 %v1860_v38, %v390_v50  ;;  %v682_v25 = vpop.f32.mrf.mxu1  ;;  %v766_v29 = vrot.slane %v765_v41, 2  ;;  %v1100_v30 = vmax.f32 %v1098_v33, %v1099_v4 }
 0x168   :  { %v683_v54 = vadd.f32 %v1865_v36, %v682_v25  ;;  %v1008_v61 = vadd.f32 %v1007_v10, %v943_v44  ;;  %v1089_v10 = vsel %vm433_vm8, %v1027_v42, -inf }
 0x169   :  { %v487_v21 = vmax.f32 %v485_v19, %v486_v23  ;;  %v412_v32 = vmax.f32 %v391_v24, 0.0  ;;  %v1091_v22 = vmax.f32 %v1089_v10, %v1090_v20  ;;  %v1101_v55 = vrot.slane %v1100_v30, 4 }
 0x16a   :  { %v704_v17 = vmax.f32 %v683_v54, 0.0  ;;  %v1031_v15 = vmax.f32 %v1008_v61, 0.0  ;;  %v774_v54 = vmax.f32 %v772_v63, %v773_v13 }
 0x16b   :  { %v430_v46 = vsel %vm416_vm7, %v412_v32, 0.0  ;;  %v2028_v47 = vsel %vm1141_vm15, %v487_v21, %v1140_v53 }
 0x16c   :  { %v489_v2 = vsel %vm433_vm8, %v430_v46, -inf  ;;  %v722_v49 = vsel %vm708_vm9, %v704_v17, 0.0  ;;  %v1107_v31 = vsel %vm433_vm8, %v1031_v15, -inf  ;;  %v1092_v17 = vrot.slane %v1091_v22, 4 }
 0x16d   :  { %v490_v57 = vmax.f32 %v488_v35, %v489_v2  ;;  %v780_v53 = vsel %vm433_vm8, %v722_v49, -inf  ;;  %v945_v43 = vpop.f32.mrf.mxu2  ;;  %v767_v49 = vmax.f32 %v765_v41, %v766_v29  ;;  %v775_v51 = vrot.slane %v774_v54, 2 }
 0x16e   :  { %v946_v16 = vadd.f32 %v1870_v37, %v945_v43  ;;  %v393_v62 = vpop.f32.mrf.mxu0  ;;  %v781_v8 = vmax.f32 %v779_v58, %v780_v53 }
 0x16f   :  { %v491_v7 = vrot.slane %v490_v57, 4  ;;  %v685_v26 = vpop.f32.mrf.mxu1  ;;  %v394_v1 = vadd.f32 %v1860_v38, %v393_v62  ;;  %v776_v11 = vmax.f32 %v774_v54, %v775_v51  ;;  %v768_v13 = vrot.slane %v767_v49, 1 }
 0x170   :  { %v1011_v5 = vadd.f32 %v1010_v59, %v946_v16  ;;  %v782_v19 = vrot.slane %v781_v8, 4  ;;  %v686_v0 = vadd.f32 %v1865_v36, %v685_v26  ;;  %v1016_v26 = vpop.f32.mrf.mxu3 }
 0x171   :  { %v492_v12 = vmax.f32 %v490_v57, %v491_v7  ;;  %v413_v39 = vmax.f32 %v394_v1, 0.0 }
 0x172   :  { %v1032_v18 = vmax.f32 %v1011_v5, 0.0  ;;  %v783_v59 = vmax.f32 %v781_v8, %v782_v19  ;;  %v705_v46 = vmax.f32 %v686_v0, 0.0  ;;  %v1102_v5 = vmax.f32 %v1100_v30, %v1101_v55 }
 0x173   :  { %v493_v3 = vrot.slane %v492_v12, 2  ;;  %v497_v63 = vsel %vm433_vm8, %v413_v39, -inf  ;;  %v777_v19 = vrot.slane %v776_v11, 1  ;;  %v769_v0 = vmax.f32 %v767_v49, %v768_v13 }
 0x174   :  { %v1050_v50 = vsel %vm1036_vm10, %v1032_v18, 0.0  ;;  %v784_v57 = vrot.slane %v783_v59, 2  ;;  %v788_v16 = vsel %vm433_vm8, %v705_v46, -inf }
 0x175   :  { %v494_v23 = vmax.f32 %v492_v12, %v493_v3  ;;  %v1108_v24 = vsel %vm433_vm8, %v1050_v50, -inf  ;;  %v948_v25 = vpop.f32.mrf.mxu2  ;;  %v1159_v40 = vsel %vm1139_vm14, %v769_v0, %v1988_v9 }
 0x176   :  { %v396_v21 = vpop.f32.mrf.mxu0  ;;  %v1109_v34 = vmax.f32 %v1107_v31, %v1108_v24  ;;  %v949_v35 = vadd.f32 %v1870_v37, %v948_v25  ;;  %v785_v52 = vmax.f32 %v783_v59, %v784_v57  ;;  %v778_v31 = vmax.f32 %v776_v11, %v777_v19 }
 0x177   :  { %v495_v32 = vrot.slane %v494_v23, 1  ;;  %v397_v14 = vadd.f32 %v1860_v38, %v396_v21  ;;  %v688_v44 = vpop.f32.mrf.mxu1 }
 0x178   :  { %v689_v45 = vadd.f32 %v1865_v36, %v688_v44  ;;  %v1110_v53 = vrot.slane %v1109_v34, 4  ;;  %v1093_v36 = vmax.f32 %v1091_v22, %v1092_v17  ;;  %v1014_v7 = vadd.f32 %v1013_v60, %v949_v35 }
 0x179   :  { %v414_v48 = vmax.f32 %v397_v14, 0.0  ;;  %v496_v2 = vmax.f32 %v494_v23, %v495_v32  ;;  %v1103_v22 = vrot.slane %v1102_v5, 2  ;;  %v786_v23 = vrot.slane %v785_v52, 1 }
 0x17a   :  { %v706_v56 = vmax.f32 %v689_v45, 0.0  ;;  %v1111_v12 = vmax.f32 %v1109_v34, %v1110_v53  ;;  %v1094_v10 = vrot.slane %v1093_v36, 2  ;;  %v1033_v3 = vmax.f32 %v1014_v7, 0.0 }
 0x17b   :  { %v432_v38 = vsel %vm416_vm7, %v414_v48, 0.0  ;;  %v1144_v43 = vsel %vm1143_vm0, %v496_v2, %v2028_v47  ;;  %v1104_v54 = vmax.f32 %v1102_v5, %v1103_v22  ;;  %v787_v59 = vmax.f32 %v785_v52, %v786_v23 }
 0x17c   :  { %v498_v58 = vsel %vm433_vm8, %v432_v38, -inf  ;;  %v724_v61 = vsel %vm708_vm9, %v706_v56, 0.0  ;;  %v1112_v50 = vrot.slane %v1111_v12, 2  ;;  %v1095_v25 = vmax.f32 %v1093_v36, %v1094_v10 }
 0x17d   :  { %v499_v62 = vmax.f32 %v497_v63, %v498_v58  ;;  %v789_v42 = vsel %vm433_vm8, %v724_v61, -inf  ;;  %v951_v8 = vpop.f32.mrf.mxu2  ;;  %v1116_v28 = vsel %vm433_vm8, %v1033_v3, -inf  ;;  %v1105_v45 = vrot.slane %v1104_v54, 1 }
 0x17e   :  { %v790_v20 = vmax.f32 %v788_v16, %v789_v42  ;;  %v952_v47 = vadd.f32 %v1870_v37, %v951_v8  ;;  %v1113_v32 = vmax.f32 %v1111_v12, %v1112_v50  ;;  %v1096_v17 = vrot.slane %v1095_v25, 1 }
 0x17f   :  { %v500_v41 = vrot.slane %v499_v62, 4  ;;  %v1160_v48 = vsel %vm1141_vm15, %v778_v31, %v1159_v40  ;;  %v1106_v53 = vmax.f32 %v1104_v54, %v1105_v45 }
 0x180   :  { %v791_v15 = vrot.slane %v790_v20, 4  ;;  %v1017_v18 = vadd.f32 %v1016_v26, %v952_v47  ;;  %v1161_v2 = vsel %vm1143_vm0, %v787_v59, %v1160_v48  ;;  %v1114_v49 = vrot.slane %v1113_v32, 1 }
 0x181   :  { %v501_v4 = vmax.f32 %v499_v62, %v500_v41  ;;  %v1097_v57 = vmax.f32 %v1095_v25, %v1096_v17 }
 0x182   :  { %v792_v1 = vmax.f32 %v790_v20, %v791_v15  ;;  %v1034_v60 = vmax.f32 %v1017_v18, 0.0  ;;  %v1115_v9 = vmax.f32 %v1113_v32, %v1114_v49 }
 0x183   :  { %v502_v33 = vrot.slane %v501_v4, 2  ;;  %v1177_v63 = vsel %vm1139_vm14, %v1097_v57, %v1992_v6  ;;  %v1290_v6 = vld [vmem:[%s2105_s8] ss:$0 sm:$0xff] }
 0x184   :  { %v793_v24 = vrot.slane %v792_v1, 2  ;;  %v1052_v37 = vsel %vm1036_vm10, %v1034_v60, 0.0  ;;  %v1178_v61 = vsel %vm1141_vm15, %v1106_v53, %v1177_v63 }
 0x185   :  { %v503_v27 = vmax.f32 %v501_v4, %v502_v33  ;;  %v1117_v29 = vsel %vm433_vm8, %v1052_v37, -inf  ;;  %v1179_v16 = vsel %vm1143_vm0, %v1115_v9, %v1178_v61 }
 0x186   :  { %v1118_v30 = vmax.f32 %v1116_v28, %v1117_v29  ;;  %v794_v21 = vmax.f32 %v792_v1, %v793_v24 }
 0x187   :  { %v504_v34 = vrot.slane %v503_v27, 1 }
 0x188   :  { %v1119_v14 = vrot.slane %v1118_v30, 4  ;;  %v795_v44 = vrot.slane %v794_v21, 1 }
 0x189   :  { %v505_v39 = vmax.f32 %v503_v27, %v504_v34 }
 0x18a   :  { %v1120_v46 = vmax.f32 %v1118_v30, %v1119_v14  ;;  %v796_v35 = vmax.f32 %v794_v21, %v795_v44 }
 0x18b   :  { %v1146_v51 = vsel %vm1145_vm1, %v505_v39, %v1144_v43 }
 0x18c   :  { %v1121_v55 = vrot.slane %v1120_v46, 2  ;;  %v1162_v56 = vsel %vm1145_vm1, %v796_v35, %v1161_v2 }
 0x18d   :  { %1163 = vrot.lane.b32.xlu1 %v1162_v56, %s1294_s7 }
 0x18e   :  { %v1122_v38 = vmax.f32 %v1120_v46, %v1121_v55 }
 0x190   :  { %v1123_v36 = vrot.slane %v1122_v38, 1 }
 0x192   :  { %v1124_v58 = vmax.f32 %v1122_v38, %v1123_v36 }
 0x194   :  { %v1180_v43 = vsel %vm1145_vm1, %v1124_v58, %v1179_v16 }
 0x195   :  { %1181 = vrot.lane.b32.xlu2 %v1180_v43, %s1295_s13 }
 0x1ef   :  { %v1182_v42 = vpop.permute.xlu2 %1181 }
 0x1ff   :  { %v1164_v62 = vpop.permute.xlu1 %1163 }
 0x200   :  { %v1184_v7 = vsel %vm433_vm8, %v1146_v51, %v1164_v62 }
 0x201   :  { %v1186_v8 = vsel %vm1185_vm2, %v1184_v7, %v1182_v42 }
 0x202   :  { %1256 = vmatmul.msk.f32.vlgmr.msrb.gmra.mxu3 %vm1194_vm3, %v1186_v8 }
 0x285   :  { %v1215_v26 = vpop.f32.mrf.mxu3 }
 0x286   :  { %v1216_v11 = vadd.f32 %v1290_v6, %v1215_v26 }
 0x288   :  { %1219 = vst.msk [vmem:[%s2106_s9] sm:$0xff] %vm1218_vm4, %v1216_v11 }

</bundles_post_ra>
